<compile_context>
chip_gen: v7x
topology: tpu7x:2x2x1
jax: 0.10.0
libtpu: 0.0.40
codegen_flags: <defaults>
</compile_context>

<pallas_src>
import functools

import jax
import jax.numpy as jnp
from jax import lax
from jax.experimental import pallas as pl
from jax.experimental.pallas import tpu as pltpu


def _attn_prop_kernel(x_ref, s_ref,
                      wq_ref, bq_ref, wk_ref, bk_ref, wv_ref, bv_ref,
                      wm_ref, bm_ref,
                      w1x_ref, w1m_ref, b1_ref, w2_ref, b2_ref,
                      out_ref,
                      msg_ref,
                      *, num_heads, head_dim):
    x = x_ref[...]                                  # (TN, D) bf16
    s = s_ref[...]                                  # (M,  D) bf16
    scale = 1.0 / (head_dim ** 0.5)

    msg_ref[...] = jnp.zeros_like(msg_ref)          # (TN, D) f32 accumulator

    def head_body(h, carry):
        # Per-head q/k/v projections: weights pre-reshaped to (H, D, hd), so no
        # lane-unaligned slicing of the activations is needed.
        qh = jnp.dot(x, wq_ref[h], preferred_element_type=jnp.float32) + bq_ref[h]
        kh = jnp.dot(s, wk_ref[h], preferred_element_type=jnp.float32) + bk_ref[h]
        vh = jnp.dot(s, wv_ref[h], preferred_element_type=jnp.float32) + bv_ref[h]

        # Scaled dot-product attention for this head (bf16 MXU, f32 softmax).
        scores = lax.dot_general(
            qh.astype(jnp.bfloat16), kh.astype(jnp.bfloat16),
            (((1,), (1,)), ((), ())),
            preferred_element_type=jnp.float32) * scale        # (TN, M) f32
        m = jnp.max(scores, axis=-1, keepdims=True)
        e = jnp.exp(scores - m)
        p = e * pl.reciprocal(jnp.sum(e, axis=-1, keepdims=True), approx=True)
        head_out = jnp.dot(p.astype(jnp.bfloat16), vh.astype(jnp.bfloat16),
                           preferred_element_type=jnp.float32)  # (TN, hd) f32

        # Fused merge conv: accumulate this head's contribution to the message.
        msg_ref[...] += jnp.dot(head_out.astype(jnp.bfloat16), wm_ref[h],
                                preferred_element_type=jnp.float32)  # (TN, D)
        return carry

    lax.fori_loop(0, num_heads, head_body, 0, unroll=True)

    message = msg_ref[...] + bm_ref[...]            # (TN, D) f32

    # MLP( cat([x, message]) ) with the concat folded into two matmuls.
    # Eval-mode BatchNorm is pre-folded into w1x/w1m/b1 in the wrapper.
    h1 = (jnp.dot(x, w1x_ref[...], preferred_element_type=jnp.float32)
          + jnp.dot(message.astype(jnp.bfloat16), w1m_ref[...],
                    preferred_element_type=jnp.float32)
          + b1_ref[...])
    h1 = jnp.maximum(h1, 0.0)
    out = jnp.dot(h1.astype(jnp.bfloat16), w2_ref[...],
                  preferred_element_type=jnp.float32) + b2_ref[...]
    out_ref[...] = out.astype(out_ref.dtype)


def attentional_propagation(x, source, params, num_heads, *, block_n=256):
    """x: (B, D, N), source: (B, D, M) -> (B, D, N)  (PyTorch NCW layout)."""
    B, D, N = x.shape
    M = source.shape[2]
    head_dim = D // num_heads
    bf16 = jnp.bfloat16

    # PyTorch's .view(B, head_dim, num_heads, L) maps channel c -> (d, h) with
    # c = d*num_heads + h.  Kernel uses head-major channels j = h*head_dim + d.
    j = jnp.arange(D)
    perm = (j % head_dim) * num_heads + (j // head_dim)   # perm[j] = pt channel

    def proj_w(w, b):
        # pt conv1d weight (Dout, Din) -> (H, Din, head_dim), head-major outputs.
        wt = jnp.transpose(w[perm, :])                              # (Din, D)
        w3 = wt.reshape(D, num_heads, head_dim).transpose(1, 0, 2)  # (H, Din, hd)
        b3 = b[perm].reshape(num_heads, 1, head_dim)
        return w3.astype(bf16), b3.astype(jnp.float32)

    wq3, bq3 = proj_w(params['wq'], params['bq'])
    wk3, bk3 = proj_w(params['wk'], params['bk'])
    wv3, bv3 = proj_w(params['wv'], params['bv'])

    # Merge conv: message = sum_h head_out_h @ wm3[h] + bm
    wmt = jnp.transpose(params['wm'][:, perm])                      # (D, Dout)
    wm3 = wmt.reshape(num_heads, head_dim, D).astype(bf16)          # (H, hd, D)
    bm = params['bm'][None, :].astype(jnp.float32)

    # MLP: cat([x, message]) @ w1.T == x @ w1[:, :D].T + message @ w1[:, D:].T
    # Fold eval-mode BatchNorm (running_mean=0, running_var=1) into w1/b1.
    # TODO(synk): training-mode BatchNorm (batch statistics) is not implemented.
    eps = 1e-5
    bn_scale = params['gamma'] / jnp.sqrt(1.0 + eps)                # (2D,)
    w1xT = (jnp.transpose(params['w1'][:, :D]) * bn_scale[None, :]).astype(bf16)
    w1mT = (jnp.transpose(params['w1'][:, D:]) * bn_scale[None, :]).astype(bf16)
    b1 = (params['b1'] * bn_scale + params['beta'])[None, :].astype(jnp.float32)
    w2T = jnp.transpose(params['w2']).astype(bf16)
    b2 = params['b2'][None, :].astype(jnp.float32)

    weight_args = [wq3, bq3, wk3, bk3, wv3, bv3, wm3, bm,
                   w1xT, w1mT, b1, w2T, b2]

    x_t = jnp.transpose(x, (0, 2, 1)).astype(bf16)        # (B, N, D)
    s_t = jnp.transpose(source, (0, 2, 1)).astype(bf16)   # (B, M, D)

    # Query-axis tiling (keeps k/v + weights resident; bounds VMEM at real sizes).
    tn = block_n if (N % block_n == 0) else N

    def const_spec(a):                                    # weights: same block always
        nd = a.ndim
        return pl.BlockSpec(a.shape, lambda b, n, _nd=nd: (0,) * _nd)

    kernel = functools.partial(_attn_prop_kernel,
                               num_heads=num_heads, head_dim=head_dim)

    out = pl.pallas_call(
        kernel,
        out_shape=jax.ShapeDtypeStruct((B, N, D), jnp.float32),
        grid=(B, N // tn),
        in_specs=[pl.BlockSpec((None, tn, D), lambda b, n: (b, n, 0)),
                  pl.BlockSpec((None, M, D), lambda b, n: (b, 0, 0))]
                 + [const_spec(a) for a in weight_args],
        out_specs=pl.BlockSpec((None, tn, D), lambda b, n: (b, n, 0)),
        scratch_shapes=[pltpu.VMEM((tn, D), jnp.float32)],
        compiler_params=pltpu.CompilerParams(
            dimension_semantics=("parallel", "parallel"),
            vmem_limit_bytes=64 * 1024 * 1024),
    )(x_t, s_t, *weight_args)

    return jnp.transpose(out, (0, 2, 1))   # back to (B, D, N)


def reference(x, src, p, num_heads):
    """Pure-JAX (f32) transcription of the PyTorch forward (eval-mode BN)."""
    B, D, N = x.shape
    dim = D // num_heads

    def conv1d(inp, w, b):       # inp (B, Cin, L), w (Cout, Cin), b (Cout,)
        return jnp.einsum('oc,bcl->bol', w, inp) + b[None, :, None]

    q = conv1d(x, p['wq'], p['bq']).reshape(B, dim, num_heads, -1)
    k = conv1d(src, p['wk'], p['bk']).reshape(B, dim, num_heads, -1)
    v = conv1d(src, p['wv'], p['bv']).reshape(B, dim, num_heads, -1)
    scores = jnp.einsum('bdhn,bdhm->bhnm', q, k) / dim ** 0.5
    prob = jax.nn.softmax(scores, axis=-1)
    o = jnp.einsum('bhnm,bdhm->bdhn', prob, v)
    msg = conv1d(o.reshape(B, D, -1), p['wm'], p['bm'])
    cat = jnp.concatenate([x, msg], axis=1)
    h1 = conv1d(cat, p['w1'], p['b1'])
    h1 = h1 / jnp.sqrt(1.0 + 1e-5) * p['gamma'][None, :, None] + p['beta'][None, :, None]
    h1 = jnp.maximum(h1, 0.0)
    return conv1d(h1, p['w2'], p['b2'])


def init_params(key, num_dim):
    D = num_dim
    ks = jax.random.split(key, 12)
    s = 0.2
    params = {
        'wq': s * jax.random.normal(ks[0], (D, D), jnp.float32),
        'bq': s * jax.random.normal(ks[1], (D,), jnp.float32),
        'wk': s * jax.random.normal(ks[2], (D, D), jnp.float32),
        'bk': s * jax.random.normal(ks[3], (D,), jnp.float32),
        'wv': s * jax.random.normal(ks[4], (D, D), jnp.float32),
        'bv': s * jax.random.normal(ks[5], (D,), jnp.float32),
        'wm': s * jax.random.normal(ks[6], (D, D), jnp.float32),
        'bm': s * jax.random.normal(ks[7], (D,), jnp.float32),
        'w1': s * jax.random.normal(ks[8], (2 * D, 2 * D), jnp.float32),
        'b1': s * jax.random.normal(ks[9], (2 * D,), jnp.float32),
        'gamma': jnp.ones((2 * D,), jnp.float32),
        'beta': jnp.zeros((2 * D,), jnp.float32),
        'w2': s * jax.random.normal(ks[10], (D, 2 * D), jnp.float32),
        'b2': jnp.zeros((D,), jnp.float32),   # nn.init.constant_(mlp[-1].bias, 0.0)
    }
    return params


if __name__ == "__main__":
    num_dim, num_heads = 32, 4
    B, N, M = 2, 8, 16

    key = jax.random.PRNGKey(0)
    kx, ks, kp = jax.random.split(key, 3)
    x = jax.random.normal(kx, (B, num_dim, N), jnp.float32)        # (B, D, N)
    source = jax.random.normal(ks, (B, num_dim, M), jnp.float32)   # (B, D, M)
    params = init_params(kp, num_dim)

    out = attentional_propagation(x, source, params, num_heads)
    out = jax.block_until_ready(out)

    ref = reference(x, source, params, num_heads)
    assert out.shape == (B, num_dim, N), out.shape
    # bf16 MXU operands (f32 accumulation) -> loosened tolerance vs the f32 reference.
    assert jnp.allclose(out, ref, atol=5e-2, rtol=5e-2), float(jnp.max(jnp.abs(out - ref)))

    print("KERNEL_OK")
</pallas_src>

<mosaic_0001>
module attributes {stable_mosaic.version = 11 : i64} {
  func.func @_attn_prop_kernel(%arg0: i32, %arg1: i32, %arg2: memref<1x8x32xbf16, #tpu.memory_space<vmem>>, %arg3: memref<1x16x32xbf16, #tpu.memory_space<vmem>>, %arg4: memref<4x32x8xbf16, #tpu.memory_space<vmem>>, %arg5: memref<4x1x8xf32, #tpu.memory_space<vmem>>, %arg6: memref<4x32x8xbf16, #tpu.memory_space<vmem>>, %arg7: memref<4x1x8xf32, #tpu.memory_space<vmem>>, %arg8: memref<4x32x8xbf16, #tpu.memory_space<vmem>>, %arg9: memref<4x1x8xf32, #tpu.memory_space<vmem>>, %arg10: memref<4x8x32xbf16, #tpu.memory_space<vmem>>, %arg11: memref<1x32xf32, #tpu.memory_space<vmem>>, %arg12: memref<32x64xbf16, #tpu.memory_space<vmem>>, %arg13: memref<32x64xbf16, #tpu.memory_space<vmem>>, %arg14: memref<1x64xf32, #tpu.memory_space<vmem>>, %arg15: memref<64x32xbf16, #tpu.memory_space<vmem>>, %arg16: memref<1x32xf32, #tpu.memory_space<vmem>>, %arg17: memref<1x8x32xf32, #tpu.memory_space<vmem>>, %arg18: memref<8x32xf32, #tpu.memory_space<vmem>>) attributes {dimension_semantics = [#tpu.dimension_semantics<parallel>, #tpu.dimension_semantics<parallel>], iteration_bounds = array<i64: 2, 1>, scalar_prefetch = 0 : i64, scratch_operands = 1 : i64, tpu.core_type = #tpu.core_type<tc>, window_params = [{transform_indices = @transform_0, window_bounds = array<i64: 1, 8, 32>}, {transform_indices = @transform_1, window_bounds = array<i64: 1, 16, 32>}, {pipeline_mode = #tpu.pipeline_mode<synchronous>, transform_indices = @transform_2, window_bounds = array<i64: 4, 32, 8>}, {pipeline_mode = #tpu.pipeline_mode<synchronous>, transform_indices = @transform_3, window_bounds = array<i64: 4, 1, 8>}, {pipeline_mode = #tpu.pipeline_mode<synchronous>, transform_indices = @transform_4, window_bounds = array<i64: 4, 32, 8>}, {pipeline_mode = #tpu.pipeline_mode<synchronous>, transform_indices = @transform_5, window_bounds = array<i64: 4, 1, 8>}, {pipeline_mode = #tpu.pipeline_mode<synchronous>, transform_indices = @transform_6, window_bounds = array<i64: 4, 32, 8>}, {pipeline_mode = #tpu.pipeline_mode<synchronous>, transform_indices = @transform_7, window_bounds = array<i64: 4, 1, 8>}, {pipeline_mode = #tpu.pipeline_mode<synchronous>, transform_indices = @transform_8, window_bounds = array<i64: 4, 8, 32>}, {pipeline_mode = #tpu.pipeline_mode<synchronous>, transform_indices = @transform_9, window_bounds = array<i64: 1, 32>}, {pipeline_mode = #tpu.pipeline_mode<synchronous>, transform_indices = @transform_10, window_bounds = array<i64: 32, 64>}, {pipeline_mode = #tpu.pipeline_mode<synchronous>, transform_indices = @transform_11, window_bounds = array<i64: 32, 64>}, {pipeline_mode = #tpu.pipeline_mode<synchronous>, transform_indices = @transform_12, window_bounds = array<i64: 1, 64>}, {pipeline_mode = #tpu.pipeline_mode<synchronous>, transform_indices = @transform_13, window_bounds = array<i64: 64, 32>}, {pipeline_mode = #tpu.pipeline_mode<synchronous>, transform_indices = @transform_14, window_bounds = array<i64: 1, 32>}, {transform_indices = @transform_15, window_bounds = array<i64: 1, 8, 32>}]} {
    %c0 = arith.constant 0 : index
    %c0_0 = arith.constant 0 : index
    %c0_1 = arith.constant 0 : index
    %0 = vector.load %arg2[%c0, %c0_0, %c0_1] : memref<1x8x32xbf16, #tpu.memory_space<vmem>>, vector<1x8x32xbf16>
    %1 = vector.shape_cast %0 : vector<1x8x32xbf16> to vector<8x32xbf16>
    %c0_2 = arith.constant 0 : index
    %c0_3 = arith.constant 0 : index
    %c0_4 = arith.constant 0 : index
    %2 = vector.load %arg3[%c0_2, %c0_3, %c0_4] : memref<1x16x32xbf16, #tpu.memory_space<vmem>>, vector<1x16x32xbf16>
    %3 = vector.shape_cast %2 : vector<1x16x32xbf16> to vector<16x32xbf16>
    %cst = arith.constant 0.000000e+00 : f32
    %4 = vector.broadcast %cst : f32 to vector<8x32xf32>
    %c0_5 = arith.constant 0 : index
    %c0_6 = arith.constant 0 : index
    %5 = vector.load %arg18[%c0_5, %c0_6] : memref<8x32xf32, #tpu.memory_space<vmem>>, vector<8x32xf32>
    tpu.vector_store %arg18[%c0_5, %c0_6], %4 {strides = array<i32>} : memref<8x32xf32, #tpu.memory_space<vmem>>, vector<8x32xf32>,
    %c0_i32 = arith.constant 0 : i32
    %6 = arith.index_cast %c0_i32 : i32 to index
    %c0_7 = arith.constant 0 : index
    %c0_8 = arith.constant 0 : index
    %7 = vector.load %arg4[%6, %c0_7, %c0_8] : memref<4x32x8xbf16, #tpu.memory_space<vmem>>, vector<1x32x8xbf16>
    %8 = vector.shape_cast %7 : vector<1x32x8xbf16> to vector<32x8xbf16>
    %cst_9 = arith.constant dense<0.000000e+00> : vector<8x8xf32>
    %9 = tpu.matmul %1, %8, %cst_9 {dimension_numbers = #tpu.dot_dimension_numbers<[1], [0], [0], [1], [0, 0, 1, 1], [], []>} : vector<8x32xbf16>, vector<32x8xbf16>, vector<8x8xf32> -> vector<8x8xf32>
    %10 = arith.index_cast %c0_i32 : i32 to index
    %c0_10 = arith.constant 0 : index
    %c0_11 = arith.constant 0 : index
    %11 = vector.load %arg5[%10, %c0_10, %c0_11] : memref<4x1x8xf32, #tpu.memory_space<vmem>>, vector<1x1x8xf32>
    %12 = vector.shape_cast %11 : vector<1x1x8xf32> to vector<1x8xf32>
    %13 = vector.broadcast %12 : vector<1x8xf32> to vector<8x8xf32>
    %14 = arith.addf %9, %13 : vector<8x8xf32>
    %15 = arith.index_cast %c0_i32 : i32 to index
    %c0_12 = arith.constant 0 : index
    %c0_13 = arith.constant 0 : index
    %16 = vector.load %arg6[%15, %c0_12, %c0_13] : memref<4x32x8xbf16, #tpu.memory_space<vmem>>, vector<1x32x8xbf16>
    %17 = vector.shape_cast %16 : vector<1x32x8xbf16> to vector<32x8xbf16>
    %cst_14 = arith.constant dense<0.000000e+00> : vector<16x8xf32>
    %18 = tpu.matmul %3, %17, %cst_14 {dimension_numbers = #tpu.dot_dimension_numbers<[1], [0], [0], [1], [0, 0, 1, 1], [], []>} : vector<16x32xbf16>, vector<32x8xbf16>, vector<16x8xf32> -> vector<16x8xf32>
    %19 = arith.index_cast %c0_i32 : i32 to index
    %c0_15 = arith.constant 0 : index
    %c0_16 = arith.constant 0 : index
    %20 = vector.load %arg7[%19, %c0_15, %c0_16] : memref<4x1x8xf32, #tpu.memory_space<vmem>>, vector<1x1x8xf32>
    %21 = vector.shape_cast %20 : vector<1x1x8xf32> to vector<1x8xf32>
    %22 = vector.broadcast %21 : vector<1x8xf32> to vector<16x8xf32>
    %23 = arith.addf %18, %22 : vector<16x8xf32>
    %24 = arith.index_cast %c0_i32 : i32 to index
    %c0_17 = arith.constant 0 : index
    %c0_18 = arith.constant 0 : index
    %25 = vector.load %arg8[%24, %c0_17, %c0_18] : memref<4x32x8xbf16, #tpu.memory_space<vmem>>, vector<1x32x8xbf16>
    %26 = vector.shape_cast %25 : vector<1x32x8xbf16> to vector<32x8xbf16>
    %cst_19 = arith.constant dense<0.000000e+00> : vector<16x8xf32>
    %27 = tpu.matmul %3, %26, %cst_19 {dimension_numbers = #tpu.dot_dimension_numbers<[1], [0], [0], [1], [0, 0, 1, 1], [], []>} : vector<16x32xbf16>, vector<32x8xbf16>, vector<16x8xf32> -> vector<16x8xf32>
    %28 = arith.index_cast %c0_i32 : i32 to index
    %c0_20 = arith.constant 0 : index
    %c0_21 = arith.constant 0 : index
    %29 = vector.load %arg9[%28, %c0_20, %c0_21] : memref<4x1x8xf32, #tpu.memory_space<vmem>>, vector<1x1x8xf32>
    %30 = vector.shape_cast %29 : vector<1x1x8xf32> to vector<1x8xf32>
    %31 = vector.broadcast %30 : vector<1x8xf32> to vector<16x8xf32>
    %32 = arith.addf %27, %31 : vector<16x8xf32>
    %33 = arith.truncf %14 : vector<8x8xf32> to vector<8x8xbf16>
    %34 = arith.truncf %23 : vector<16x8xf32> to vector<16x8xbf16>
    %cst_22 = arith.constant dense<0.000000e+00> : vector<8x16xf32>
    %35 = tpu.matmul %33, %34, %cst_22 {dimension_numbers = #tpu.dot_dimension_numbers<[1], [1], [0], [0], [0, 0, 1, 0], [], []>} : vector<8x8xbf16>, vector<16x8xbf16>, vector<8x16xf32> -> vector<8x16xf32>
    %cst_23 = arith.constant 0.353553385 : f32
    %36 = vector.broadcast %cst_23 : f32 to vector<8x16xf32>
    %37 = arith.mulf %35, %36 : vector<8x16xf32>
    %cst_24 = arith.constant dense<0xFF800000> : vector<8xf32>
    %38 = vector.multi_reduction <maximumf>, %37, %cst_24 [1] : vector<8x16xf32> to vector<8xf32>
    %39 = vector.shape_cast %38 : vector<8xf32> to vector<8x1xf32>
    %40 = vector.broadcast %39 : vector<8x1xf32> to vector<8x16xf32>
    %41 = arith.subf %37, %40 : vector<8x16xf32>
    %42 = math.exp %41 : vector<8x16xf32>
    %cst_25 = arith.constant dense<0.000000e+00> : vector<8xf32>
    %43 = vector.multi_reduction <add>, %42, %cst_25 [1] : vector<8x16xf32> to vector<8xf32>
    %44 = vector.shape_cast %43 : vector<8xf32> to vector<8x1xf32>
    %45 = tpu.reciprocal %44 {approx = true} : vector<8x1xf32> -> vector<8x1xf32>
    %46 = vector.broadcast %45 : vector<8x1xf32> to vector<8x16xf32>
    %47 = arith.mulf %42, %46 : vector<8x16xf32>
    %48 = arith.truncf %47 : vector<8x16xf32> to vector<8x16xbf16>
    %49 = arith.truncf %32 : vector<16x8xf32> to vector<16x8xbf16>
    %cst_26 = arith.constant dense<0.000000e+00> : vector<8x8xf32>
    %50 = tpu.matmul %48, %49, %cst_26 {dimension_numbers = #tpu.dot_dimension_numbers<[1], [0], [0], [1], [0, 0, 1, 1], [], []>} : vector<8x16xbf16>, vector<16x8xbf16>, vector<8x8xf32> -> vector<8x8xf32>
    %c0_27 = arith.constant 0 : index
    %c0_28 = arith.constant 0 : index
    %51 = vector.load %arg18[%c0_27, %c0_28] : memref<8x32xf32, #tpu.memory_space<vmem>>, vector<8x32xf32>
    %52 = arith.truncf %50 : vector<8x8xf32> to vector<8x8xbf16>
    %53 = arith.index_cast %c0_i32 : i32 to index
    %c0_29 = arith.constant 0 : index
    %c0_30 = arith.constant 0 : index
    %54 = vector.load %arg10[%53, %c0_29, %c0_30] : memref<4x8x32xbf16, #tpu.memory_space<vmem>>, vector<1x8x32xbf16>
    %55 = vector.shape_cast %54 : vector<1x8x32xbf16> to vector<8x32xbf16>
    %cst_31 = arith.constant dense<0.000000e+00> : vector<8x32xf32>
    %56 = tpu.matmul %52, %55, %cst_31 {dimension_numbers = #tpu.dot_dimension_numbers<[1], [0], [0], [1], [0, 0, 1, 1], [], []>} : vector<8x8xbf16>, vector<8x32xbf16>, vector<8x32xf32> -> vector<8x32xf32>
    %57 = arith.addf %51, %56 : vector<8x32xf32>
    %c0_32 = arith.constant 0 : index
    %c0_33 = arith.constant 0 : index
    %58 = vector.load %arg18[%c0_32, %c0_33] : memref<8x32xf32, #tpu.memory_space<vmem>>, vector<8x32xf32>
    tpu.vector_store %arg18[%c0_32, %c0_33], %57 {strides = array<i32>} : memref<8x32xf32, #tpu.memory_space<vmem>>, vector<8x32xf32>,
    %c1_i32 = arith.constant 1 : i32
    %59 = arith.index_cast %c1_i32 : i32 to index
    %c0_34 = arith.constant 0 : index
    %c0_35 = arith.constant 0 : index
    %60 = vector.load %arg4[%59, %c0_34, %c0_35] : memref<4x32x8xbf16, #tpu.memory_space<vmem>>, vector<1x32x8xbf16>
    %61 = vector.shape_cast %60 : vector<1x32x8xbf16> to vector<32x8xbf16>
    %cst_36 = arith.constant dense<0.000000e+00> : vector<8x8xf32>
    %62 = tpu.matmul %1, %61, %cst_36 {dimension_numbers = #tpu.dot_dimension_numbers<[1], [0], [0], [1], [0, 0, 1, 1], [], []>} : vector<8x32xbf16>, vector<32x8xbf16>, vector<8x8xf32> -> vector<8x8xf32>
    %63 = arith.index_cast %c1_i32 : i32 to index
    %c0_37 = arith.constant 0 : index
    %c0_38 = arith.constant 0 : index
    %64 = vector.load %arg5[%63, %c0_37, %c0_38] : memref<4x1x8xf32, #tpu.memory_space<vmem>>, vector<1x1x8xf32>
    %65 = vector.shape_cast %64 : vector<1x1x8xf32> to vector<1x8xf32>
    %66 = vector.broadcast %65 : vector<1x8xf32> to vector<8x8xf32>
    %67 = arith.addf %62, %66 : vector<8x8xf32>
    %68 = arith.index_cast %c1_i32 : i32 to index
    %c0_39 = arith.constant 0 : index
    %c0_40 = arith.constant 0 : index
    %69 = vector.load %arg6[%68, %c0_39, %c0_40] : memref<4x32x8xbf16, #tpu.memory_space<vmem>>, vector<1x32x8xbf16>
    %70 = vector.shape_cast %69 : vector<1x32x8xbf16> to vector<32x8xbf16>
    %cst_41 = arith.constant dense<0.000000e+00> : vector<16x8xf32>
    %71 = tpu.matmul %3, %70, %cst_41 {dimension_numbers = #tpu.dot_dimension_numbers<[1], [0], [0], [1], [0, 0, 1, 1], [], []>} : vector<16x32xbf16>, vector<32x8xbf16>, vector<16x8xf32> -> vector<16x8xf32>
    %72 = arith.index_cast %c1_i32 : i32 to index
    %c0_42 = arith.constant 0 : index
    %c0_43 = arith.constant 0 : index
    %73 = vector.load %arg7[%72, %c0_42, %c0_43] : memref<4x1x8xf32, #tpu.memory_space<vmem>>, vector<1x1x8xf32>
    %74 = vector.shape_cast %73 : vector<1x1x8xf32> to vector<1x8xf32>
    %75 = vector.broadcast %74 : vector<1x8xf32> to vector<16x8xf32>
    %76 = arith.addf %71, %75 : vector<16x8xf32>
    %77 = arith.index_cast %c1_i32 : i32 to index
    %c0_44 = arith.constant 0 : index
    %c0_45 = arith.constant 0 : index
    %78 = vector.load %arg8[%77, %c0_44, %c0_45] : memref<4x32x8xbf16, #tpu.memory_space<vmem>>, vector<1x32x8xbf16>
    %79 = vector.shape_cast %78 : vector<1x32x8xbf16> to vector<32x8xbf16>
    %cst_46 = arith.constant dense<0.000000e+00> : vector<16x8xf32>
    %80 = tpu.matmul %3, %79, %cst_46 {dimension_numbers = #tpu.dot_dimension_numbers<[1], [0], [0], [1], [0, 0, 1, 1], [], []>} : vector<16x32xbf16>, vector<32x8xbf16>, vector<16x8xf32> -> vector<16x8xf32>
    %81 = arith.index_cast %c1_i32 : i32 to index
    %c0_47 = arith.constant 0 : index
    %c0_48 = arith.constant 0 : index
    %82 = vector.load %arg9[%81, %c0_47, %c0_48] : memref<4x1x8xf32, #tpu.memory_space<vmem>>, vector<1x1x8xf32>
    %83 = vector.shape_cast %82 : vector<1x1x8xf32> to vector<1x8xf32>
    %84 = vector.broadcast %83 : vector<1x8xf32> to vector<16x8xf32>
    %85 = arith.addf %80, %84 : vector<16x8xf32>
    %86 = arith.truncf %67 : vector<8x8xf32> to vector<8x8xbf16>
    %87 = arith.truncf %76 : vector<16x8xf32> to vector<16x8xbf16>
    %cst_49 = arith.constant dense<0.000000e+00> : vector<8x16xf32>
    %88 = tpu.matmul %86, %87, %cst_49 {dimension_numbers = #tpu.dot_dimension_numbers<[1], [1], [0], [0], [0, 0, 1, 0], [], []>} : vector<8x8xbf16>, vector<16x8xbf16>, vector<8x16xf32> -> vector<8x16xf32>
    %cst_50 = arith.constant 0.353553385 : f32
    %89 = vector.broadcast %cst_50 : f32 to vector<8x16xf32>
    %90 = arith.mulf %88, %89 : vector<8x16xf32>
    %cst_51 = arith.constant dense<0xFF800000> : vector<8xf32>
    %91 = vector.multi_reduction <maximumf>, %90, %cst_51 [1] : vector<8x16xf32> to vector<8xf32>
    %92 = vector.shape_cast %91 : vector<8xf32> to vector<8x1xf32>
    %93 = vector.broadcast %92 : vector<8x1xf32> to vector<8x16xf32>
    %94 = arith.subf %90, %93 : vector<8x16xf32>
    %95 = math.exp %94 : vector<8x16xf32>
    %cst_52 = arith.constant dense<0.000000e+00> : vector<8xf32>
    %96 = vector.multi_reduction <add>, %95, %cst_52 [1] : vector<8x16xf32> to vector<8xf32>
    %97 = vector.shape_cast %96 : vector<8xf32> to vector<8x1xf32>
    %98 = tpu.reciprocal %97 {approx = true} : vector<8x1xf32> -> vector<8x1xf32>
    %99 = vector.broadcast %98 : vector<8x1xf32> to vector<8x16xf32>
    %100 = arith.mulf %95, %99 : vector<8x16xf32>
    %101 = arith.truncf %100 : vector<8x16xf32> to vector<8x16xbf16>
    %102 = arith.truncf %85 : vector<16x8xf32> to vector<16x8xbf16>
    %cst_53 = arith.constant dense<0.000000e+00> : vector<8x8xf32>
    %103 = tpu.matmul %101, %102, %cst_53 {dimension_numbers = #tpu.dot_dimension_numbers<[1], [0], [0], [1], [0, 0, 1, 1], [], []>} : vector<8x16xbf16>, vector<16x8xbf16>, vector<8x8xf32> -> vector<8x8xf32>
    %c0_54 = arith.constant 0 : index
    %c0_55 = arith.constant 0 : index
    %104 = vector.load %arg18[%c0_54, %c0_55] : memref<8x32xf32, #tpu.memory_space<vmem>>, vector<8x32xf32>
    %105 = arith.truncf %103 : vector<8x8xf32> to vector<8x8xbf16>
    %106 = arith.index_cast %c1_i32 : i32 to index
    %c0_56 = arith.constant 0 : index
    %c0_57 = arith.constant 0 : index
    %107 = vector.load %arg10[%106, %c0_56, %c0_57] : memref<4x8x32xbf16, #tpu.memory_space<vmem>>, vector<1x8x32xbf16>
    %108 = vector.shape_cast %107 : vector<1x8x32xbf16> to vector<8x32xbf16>
    %cst_58 = arith.constant dense<0.000000e+00> : vector<8x32xf32>
    %109 = tpu.matmul %105, %108, %cst_58 {dimension_numbers = #tpu.dot_dimension_numbers<[1], [0], [0], [1], [0, 0, 1, 1], [], []>} : vector<8x8xbf16>, vector<8x32xbf16>, vector<8x32xf32> -> vector<8x32xf32>
    %110 = arith.addf %104, %109 : vector<8x32xf32>
    %c0_59 = arith.constant 0 : index
    %c0_60 = arith.constant 0 : index
    %111 = vector.load %arg18[%c0_59, %c0_60] : memref<8x32xf32, #tpu.memory_space<vmem>>, vector<8x32xf32>
    tpu.vector_store %arg18[%c0_59, %c0_60], %110 {strides = array<i32>} : memref<8x32xf32, #tpu.memory_space<vmem>>, vector<8x32xf32>,
    %c2_i32 = arith.constant 2 : i32
    %112 = arith.index_cast %c2_i32 : i32 to index
    %c0_61 = arith.constant 0 : index
    %c0_62 = arith.constant 0 : index
    %113 = vector.load %arg4[%112, %c0_61, %c0_62] : memref<4x32x8xbf16, #tpu.memory_space<vmem>>, vector<1x32x8xbf16>
    %114 = vector.shape_cast %113 : vector<1x32x8xbf16> to vector<32x8xbf16>
    %cst_63 = arith.constant dense<0.000000e+00> : vector<8x8xf32>
    %115 = tpu.matmul %1, %114, %cst_63 {dimension_numbers = #tpu.dot_dimension_numbers<[1], [0], [0], [1], [0, 0, 1, 1], [], []>} : vector<8x32xbf16>, vector<32x8xbf16>, vector<8x8xf32> -> vector<8x8xf32>
    %116 = arith.index_cast %c2_i32 : i32 to index
    %c0_64 = arith.constant 0 : index
    %c0_65 = arith.constant 0 : index
    %117 = vector.load %arg5[%116, %c0_64, %c0_65] : memref<4x1x8xf32, #tpu.memory_space<vmem>>, vector<1x1x8xf32>
    %118 = vector.shape_cast %117 : vector<1x1x8xf32> to vector<1x8xf32>
    %119 = vector.broadcast %118 : vector<1x8xf32> to vector<8x8xf32>
    %120 = arith.addf %115, %119 : vector<8x8xf32>
    %121 = arith.index_cast %c2_i32 : i32 to index
    %c0_66 = arith.constant 0 : index
    %c0_67 = arith.constant 0 : index
    %122 = vector.load %arg6[%121, %c0_66, %c0_67] : memref<4x32x8xbf16, #tpu.memory_space<vmem>>, vector<1x32x8xbf16>
    %123 = vector.shape_cast %122 : vector<1x32x8xbf16> to vector<32x8xbf16>
    %cst_68 = arith.constant dense<0.000000e+00> : vector<16x8xf32>
    %124 = tpu.matmul %3, %123, %cst_68 {dimension_numbers = #tpu.dot_dimension_numbers<[1], [0], [0], [1], [0, 0, 1, 1], [], []>} : vector<16x32xbf16>, vector<32x8xbf16>, vector<16x8xf32> -> vector<16x8xf32>
    %125 = arith.index_cast %c2_i32 : i32 to index
    %c0_69 = arith.constant 0 : index
    %c0_70 = arith.constant 0 : index
    %126 = vector.load %arg7[%125, %c0_69, %c0_70] : memref<4x1x8xf32, #tpu.memory_space<vmem>>, vector<1x1x8xf32>
    %127 = vector.shape_cast %126 : vector<1x1x8xf32> to vector<1x8xf32>
    %128 = vector.broadcast %127 : vector<1x8xf32> to vector<16x8xf32>
    %129 = arith.addf %124, %128 : vector<16x8xf32>
    %130 = arith.index_cast %c2_i32 : i32 to index
    %c0_71 = arith.constant 0 : index
    %c0_72 = arith.constant 0 : index
    %131 = vector.load %arg8[%130, %c0_71, %c0_72] : memref<4x32x8xbf16, #tpu.memory_space<vmem>>, vector<1x32x8xbf16>
    %132 = vector.shape_cast %131 : vector<1x32x8xbf16> to vector<32x8xbf16>
    %cst_73 = arith.constant dense<0.000000e+00> : vector<16x8xf32>
    %133 = tpu.matmul %3, %132, %cst_73 {dimension_numbers = #tpu.dot_dimension_numbers<[1], [0], [0], [1], [0, 0, 1, 1], [], []>} : vector<16x32xbf16>, vector<32x8xbf16>, vector<16x8xf32> -> vector<16x8xf32>
    %134 = arith.index_cast %c2_i32 : i32 to index
    %c0_74 = arith.constant 0 : index
    %c0_75 = arith.constant 0 : index
    %135 = vector.load %arg9[%134, %c0_74, %c0_75] : memref<4x1x8xf32, #tpu.memory_space<vmem>>, vector<1x1x8xf32>
    %136 = vector.shape_cast %135 : vector<1x1x8xf32> to vector<1x8xf32>
    %137 = vector.broadcast %136 : vector<1x8xf32> to vector<16x8xf32>
    %138 = arith.addf %133, %137 : vector<16x8xf32>
    %139 = arith.truncf %120 : vector<8x8xf32> to vector<8x8xbf16>
    %140 = arith.truncf %129 : vector<16x8xf32> to vector<16x8xbf16>
    %cst_76 = arith.constant dense<0.000000e+00> : vector<8x16xf32>
    %141 = tpu.matmul %139, %140, %cst_76 {dimension_numbers = #tpu.dot_dimension_numbers<[1], [1], [0], [0], [0, 0, 1, 0], [], []>} : vector<8x8xbf16>, vector<16x8xbf16>, vector<8x16xf32> -> vector<8x16xf32>
    %cst_77 = arith.constant 0.353553385 : f32
    %142 = vector.broadcast %cst_77 : f32 to vector<8x16xf32>
    %143 = arith.mulf %141, %142 : vector<8x16xf32>
    %cst_78 = arith.constant dense<0xFF800000> : vector<8xf32>
    %144 = vector.multi_reduction <maximumf>, %143, %cst_78 [1] : vector<8x16xf32> to vector<8xf32>
    %145 = vector.shape_cast %144 : vector<8xf32> to vector<8x1xf32>
    %146 = vector.broadcast %145 : vector<8x1xf32> to vector<8x16xf32>
    %147 = arith.subf %143, %146 : vector<8x16xf32>
    %148 = math.exp %147 : vector<8x16xf32>
    %cst_79 = arith.constant dense<0.000000e+00> : vector<8xf32>
    %149 = vector.multi_reduction <add>, %148, %cst_79 [1] : vector<8x16xf32> to vector<8xf32>
    %150 = vector.shape_cast %149 : vector<8xf32> to vector<8x1xf32>
    %151 = tpu.reciprocal %150 {approx = true} : vector<8x1xf32> -> vector<8x1xf32>
    %152 = vector.broadcast %151 : vector<8x1xf32> to vector<8x16xf32>
    %153 = arith.mulf %148, %152 : vector<8x16xf32>
    %154 = arith.truncf %153 : vector<8x16xf32> to vector<8x16xbf16>
    %155 = arith.truncf %138 : vector<16x8xf32> to vector<16x8xbf16>
    %cst_80 = arith.constant dense<0.000000e+00> : vector<8x8xf32>
    %156 = tpu.matmul %154, %155, %cst_80 {dimension_numbers = #tpu.dot_dimension_numbers<[1], [0], [0], [1], [0, 0, 1, 1], [], []>} : vector<8x16xbf16>, vector<16x8xbf16>, vector<8x8xf32> -> vector<8x8xf32>
    %c0_81 = arith.constant 0 : index
    %c0_82 = arith.constant 0 : index
    %157 = vector.load %arg18[%c0_81, %c0_82] : memref<8x32xf32, #tpu.memory_space<vmem>>, vector<8x32xf32>
    %158 = arith.truncf %156 : vector<8x8xf32> to vector<8x8xbf16>
    %159 = arith.index_cast %c2_i32 : i32 to index
    %c0_83 = arith.constant 0 : index
    %c0_84 = arith.constant 0 : index
    %160 = vector.load %arg10[%159, %c0_83, %c0_84] : memref<4x8x32xbf16, #tpu.memory_space<vmem>>, vector<1x8x32xbf16>
    %161 = vector.shape_cast %160 : vector<1x8x32xbf16> to vector<8x32xbf16>
    %cst_85 = arith.constant dense<0.000000e+00> : vector<8x32xf32>
    %162 = tpu.matmul %158, %161, %cst_85 {dimension_numbers = #tpu.dot_dimension_numbers<[1], [0], [0], [1], [0, 0, 1, 1], [], []>} : vector<8x8xbf16>, vector<8x32xbf16>, vector<8x32xf32> -> vector<8x32xf32>
    %163 = arith.addf %157, %162 : vector<8x32xf32>
    %c0_86 = arith.constant 0 : index
    %c0_87 = arith.constant 0 : index
    %164 = vector.load %arg18[%c0_86, %c0_87] : memref<8x32xf32, #tpu.memory_space<vmem>>, vector<8x32xf32>
    tpu.vector_store %arg18[%c0_86, %c0_87], %163 {strides = array<i32>} : memref<8x32xf32, #tpu.memory_space<vmem>>, vector<8x32xf32>,
    %c3_i32 = arith.constant 3 : i32
    %165 = arith.index_cast %c3_i32 : i32 to index
    %c0_88 = arith.constant 0 : index
    %c0_89 = arith.constant 0 : index
    %166 = vector.load %arg4[%165, %c0_88, %c0_89] : memref<4x32x8xbf16, #tpu.memory_space<vmem>>, vector<1x32x8xbf16>
    %167 = vector.shape_cast %166 : vector<1x32x8xbf16> to vector<32x8xbf16>
    %cst_90 = arith.constant dense<0.000000e+00> : vector<8x8xf32>
    %168 = tpu.matmul %1, %167, %cst_90 {dimension_numbers = #tpu.dot_dimension_numbers<[1], [0], [0], [1], [0, 0, 1, 1], [], []>} : vector<8x32xbf16>, vector<32x8xbf16>, vector<8x8xf32> -> vector<8x8xf32>
    %169 = arith.index_cast %c3_i32 : i32 to index
    %c0_91 = arith.constant 0 : index
    %c0_92 = arith.constant 0 : index
    %170 = vector.load %arg5[%169, %c0_91, %c0_92] : memref<4x1x8xf32, #tpu.memory_space<vmem>>, vector<1x1x8xf32>
    %171 = vector.shape_cast %170 : vector<1x1x8xf32> to vector<1x8xf32>
    %172 = vector.broadcast %171 : vector<1x8xf32> to vector<8x8xf32>
    %173 = arith.addf %168, %172 : vector<8x8xf32>
    %174 = arith.index_cast %c3_i32 : i32 to index
    %c0_93 = arith.constant 0 : index
    %c0_94 = arith.constant 0 : index
    %175 = vector.load %arg6[%174, %c0_93, %c0_94] : memref<4x32x8xbf16, #tpu.memory_space<vmem>>, vector<1x32x8xbf16>
    %176 = vector.shape_cast %175 : vector<1x32x8xbf16> to vector<32x8xbf16>
    %cst_95 = arith.constant dense<0.000000e+00> : vector<16x8xf32>
    %177 = tpu.matmul %3, %176, %cst_95 {dimension_numbers = #tpu.dot_dimension_numbers<[1], [0], [0], [1], [0, 0, 1, 1], [], []>} : vector<16x32xbf16>, vector<32x8xbf16>, vector<16x8xf32> -> vector<16x8xf32>
    %178 = arith.index_cast %c3_i32 : i32 to index
    %c0_96 = arith.constant 0 : index
    %c0_97 = arith.constant 0 : index
    %179 = vector.load %arg7[%178, %c0_96, %c0_97] : memref<4x1x8xf32, #tpu.memory_space<vmem>>, vector<1x1x8xf32>
    %180 = vector.shape_cast %179 : vector<1x1x8xf32> to vector<1x8xf32>
    %181 = vector.broadcast %180 : vector<1x8xf32> to vector<16x8xf32>
    %182 = arith.addf %177, %181 : vector<16x8xf32>
    %183 = arith.index_cast %c3_i32 : i32 to index
    %c0_98 = arith.constant 0 : index
    %c0_99 = arith.constant 0 : index
    %184 = vector.load %arg8[%183, %c0_98, %c0_99] : memref<4x32x8xbf16, #tpu.memory_space<vmem>>, vector<1x32x8xbf16>
    %185 = vector.shape_cast %184 : vector<1x32x8xbf16> to vector<32x8xbf16>
    %cst_100 = arith.constant dense<0.000000e+00> : vector<16x8xf32>
    %186 = tpu.matmul %3, %185, %cst_100 {dimension_numbers = #tpu.dot_dimension_numbers<[1], [0], [0], [1], [0, 0, 1, 1], [], []>} : vector<16x32xbf16>, vector<32x8xbf16>, vector<16x8xf32> -> vector<16x8xf32>
    %187 = arith.index_cast %c3_i32 : i32 to index
    %c0_101 = arith.constant 0 : index
    %c0_102 = arith.constant 0 : index
    %188 = vector.load %arg9[%187, %c0_101, %c0_102] : memref<4x1x8xf32, #tpu.memory_space<vmem>>, vector<1x1x8xf32>
    %189 = vector.shape_cast %188 : vector<1x1x8xf32> to vector<1x8xf32>
    %190 = vector.broadcast %189 : vector<1x8xf32> to vector<16x8xf32>
    %191 = arith.addf %186, %190 : vector<16x8xf32>
    %192 = arith.truncf %173 : vector<8x8xf32> to vector<8x8xbf16>
    %193 = arith.truncf %182 : vector<16x8xf32> to vector<16x8xbf16>
    %cst_103 = arith.constant dense<0.000000e+00> : vector<8x16xf32>
    %194 = tpu.matmul %192, %193, %cst_103 {dimension_numbers = #tpu.dot_dimension_numbers<[1], [1], [0], [0], [0, 0, 1, 0], [], []>} : vector<8x8xbf16>, vector<16x8xbf16>, vector<8x16xf32> -> vector<8x16xf32>
    %cst_104 = arith.constant 0.353553385 : f32
    %195 = vector.broadcast %cst_104 : f32 to vector<8x16xf32>
    %196 = arith.mulf %194, %195 : vector<8x16xf32>
    %cst_105 = arith.constant dense<0xFF800000> : vector<8xf32>
    %197 = vector.multi_reduction <maximumf>, %196, %cst_105 [1] : vector<8x16xf32> to vector<8xf32>
    %198 = vector.shape_cast %197 : vector<8xf32> to vector<8x1xf32>
    %199 = vector.broadcast %198 : vector<8x1xf32> to vector<8x16xf32>
    %200 = arith.subf %196, %199 : vector<8x16xf32>
    %201 = math.exp %200 : vector<8x16xf32>
    %cst_106 = arith.constant dense<0.000000e+00> : vector<8xf32>
    %202 = vector.multi_reduction <add>, %201, %cst_106 [1] : vector<8x16xf32> to vector<8xf32>
    %203 = vector.shape_cast %202 : vector<8xf32> to vector<8x1xf32>
    %204 = tpu.reciprocal %203 {approx = true} : vector<8x1xf32> -> vector<8x1xf32>
    %205 = vector.broadcast %204 : vector<8x1xf32> to vector<8x16xf32>
    %206 = arith.mulf %201, %205 : vector<8x16xf32>
    %207 = arith.truncf %206 : vector<8x16xf32> to vector<8x16xbf16>
    %208 = arith.truncf %191 : vector<16x8xf32> to vector<16x8xbf16>
    %cst_107 = arith.constant dense<0.000000e+00> : vector<8x8xf32>
    %209 = tpu.matmul %207, %208, %cst_107 {dimension_numbers = #tpu.dot_dimension_numbers<[1], [0], [0], [1], [0, 0, 1, 1], [], []>} : vector<8x16xbf16>, vector<16x8xbf16>, vector<8x8xf32> -> vector<8x8xf32>
    %c0_108 = arith.constant 0 : index
    %c0_109 = arith.constant 0 : index
    %210 = vector.load %arg18[%c0_108, %c0_109] : memref<8x32xf32, #tpu.memory_space<vmem>>, vector<8x32xf32>
    %211 = arith.truncf %209 : vector<8x8xf32> to vector<8x8xbf16>
    %212 = arith.index_cast %c3_i32 : i32 to index
    %c0_110 = arith.constant 0 : index
    %c0_111 = arith.constant 0 : index
    %213 = vector.load %arg10[%212, %c0_110, %c0_111] : memref<4x8x32xbf16, #tpu.memory_space<vmem>>, vector<1x8x32xbf16>
    %214 = vector.shape_cast %213 : vector<1x8x32xbf16> to vector<8x32xbf16>
    %cst_112 = arith.constant dense<0.000000e+00> : vector<8x32xf32>
    %215 = tpu.matmul %211, %214, %cst_112 {dimension_numbers = #tpu.dot_dimension_numbers<[1], [0], [0], [1], [0, 0, 1, 1], [], []>} : vector<8x8xbf16>, vector<8x32xbf16>, vector<8x32xf32> -> vector<8x32xf32>
    %216 = arith.addf %210, %215 : vector<8x32xf32>
    %c0_113 = arith.constant 0 : index
    %c0_114 = arith.constant 0 : index
    %217 = vector.load %arg18[%c0_113, %c0_114] : memref<8x32xf32, #tpu.memory_space<vmem>>, vector<8x32xf32>
    tpu.vector_store %arg18[%c0_113, %c0_114], %216 {strides = array<i32>} : memref<8x32xf32, #tpu.memory_space<vmem>>, vector<8x32xf32>,
    %c4_i32 = arith.constant 4 : i32
    %c0_115 = arith.constant 0 : index
    %c0_116 = arith.constant 0 : index
    %218 = vector.load %arg18[%c0_115, %c0_116] : memref<8x32xf32, #tpu.memory_space<vmem>>, vector<8x32xf32>
    %c0_117 = arith.constant 0 : index
    %c0_118 = arith.constant 0 : index
    %219 = vector.load %arg11[%c0_117, %c0_118] : memref<1x32xf32, #tpu.memory_space<vmem>>, vector<1x32xf32>
    %220 = vector.broadcast %219 : vector<1x32xf32> to vector<8x32xf32>
    %221 = arith.addf %218, %220 : vector<8x32xf32>
    %c0_119 = arith.constant 0 : index
    %c0_120 = arith.constant 0 : index
    %222 = vector.load %arg12[%c0_119, %c0_120] : memref<32x64xbf16, #tpu.memory_space<vmem>>, vector<32x64xbf16>
    %cst_121 = arith.constant dense<0.000000e+00> : vector<8x64xf32>
    %223 = tpu.matmul %1, %222, %cst_121 {dimension_numbers = #tpu.dot_dimension_numbers<[1], [0], [0], [1], [0, 0, 1, 1], [], []>} : vector<8x32xbf16>, vector<32x64xbf16>, vector<8x64xf32> -> vector<8x64xf32>
    %224 = arith.truncf %221 : vector<8x32xf32> to vector<8x32xbf16>
    %c0_122 = arith.constant 0 : index
    %c0_123 = arith.constant 0 : index
    %225 = vector.load %arg13[%c0_122, %c0_123] : memref<32x64xbf16, #tpu.memory_space<vmem>>, vector<32x64xbf16>
    %cst_124 = arith.constant dense<0.000000e+00> : vector<8x64xf32>
    %226 = tpu.matmul %224, %225, %cst_124 {dimension_numbers = #tpu.dot_dimension_numbers<[1], [0], [0], [1], [0, 0, 1, 1], [], []>} : vector<8x32xbf16>, vector<32x64xbf16>, vector<8x64xf32> -> vector<8x64xf32>
    %227 = arith.addf %223, %226 : vector<8x64xf32>
    %c0_125 = arith.constant 0 : index
    %c0_126 = arith.constant 0 : index
    %228 = vector.load %arg14[%c0_125, %c0_126] : memref<1x64xf32, #tpu.memory_space<vmem>>, vector<1x64xf32>
    %229 = vector.broadcast %228 : vector<1x64xf32> to vector<8x64xf32>
    %230 = arith.addf %227, %229 : vector<8x64xf32>
    %cst_127 = arith.constant 0.000000e+00 : f32
    %231 = vector.broadcast %cst_127 : f32 to vector<8x64xf32>
    %232 = arith.maximumf %230, %231 : vector<8x64xf32>
    %233 = arith.truncf %232 : vector<8x64xf32> to vector<8x64xbf16>
    %c0_128 = arith.constant 0 : index
    %c0_129 = arith.constant 0 : index
    %234 = vector.load %arg15[%c0_128, %c0_129] : memref<64x32xbf16, #tpu.memory_space<vmem>>, vector<64x32xbf16>
    %cst_130 = arith.constant dense<0.000000e+00> : vector<8x32xf32>
    %235 = tpu.matmul %233, %234, %cst_130 {dimension_numbers = #tpu.dot_dimension_numbers<[1], [0], [0], [1], [0, 0, 1, 1], [], []>} : vector<8x64xbf16>, vector<64x32xbf16>, vector<8x32xf32> -> vector<8x32xf32>
    %c0_131 = arith.constant 0 : index
    %c0_132 = arith.constant 0 : index
    %236 = vector.load %arg16[%c0_131, %c0_132] : memref<1x32xf32, #tpu.memory_space<vmem>>, vector<1x32xf32>
    %237 = vector.broadcast %236 : vector<1x32xf32> to vector<8x32xf32>
    %238 = arith.addf %235, %237 : vector<8x32xf32>
    %c0_133 = arith.constant 0 : index
    %c0_134 = arith.constant 0 : index
    %c0_135 = arith.constant 0 : index
    %239 = vector.load %arg17[%c0_133, %c0_134, %c0_135] : memref<1x8x32xf32, #tpu.memory_space<vmem>>, vector<1x8x32xf32>
    %240 = vector.shape_cast %239 : vector<1x8x32xf32> to vector<8x32xf32>
    %241 = vector.shape_cast %238 : vector<8x32xf32> to vector<1x8x32xf32>
    tpu.vector_store %arg17[%c0_133, %c0_134, %c0_135], %241 {strides = array<i32>} : memref<1x8x32xf32, #tpu.memory_space<vmem>>, vector<1x8x32xf32>,
    return
  }
  func.func @transform_0(%arg0: i32, %arg1: i32) -> (i32, i32, i32) {
    %c0_i32 = arith.constant 0 : i32
    %c0_i32_0 = arith.constant 0 : i32
    return %arg0, %arg1, %c0_i32 : i32, i32, i32
  }
  func.func @transform_1(%arg0: i32, %arg1: i32) -> (i32, i32, i32) {
    %c0_i32 = arith.constant 0 : i32
    %c0_i32_0 = arith.constant 0 : i32
    %c0_i32_1 = arith.constant 0 : i32
    return %arg0, %c0_i32, %c0_i32_0 : i32, i32, i32
  }
  func.func @transform_2(%arg0: i32, %arg1: i32) -> (i32, i32, i32) {
    %c0_i32 = arith.constant 0 : i32
    %c0_i32_0 = arith.constant 0 : i32
    %c0_i32_1 = arith.constant 0 : i32
    %c0_i32_2 = arith.constant 0 : i32
    return %c0_i32, %c0_i32_0, %c0_i32_1 : i32, i32, i32
  }
  func.func @transform_3(%arg0: i32, %arg1: i32) -> (i32, i32, i32) {
    %c0_i32 = arith.constant 0 : i32
    %c0_i32_0 = arith.constant 0 : i32
    %c0_i32_1 = arith.constant 0 : i32
    %c0_i32_2 = arith.constant 0 : i32
    return %c0_i32, %c0_i32_0, %c0_i32_1 : i32, i32, i32
  }
  func.func @transform_4(%arg0: i32, %arg1: i32) -> (i32, i32, i32) {
    %c0_i32 = arith.constant 0 : i32
    %c0_i32_0 = arith.constant 0 : i32
    %c0_i32_1 = arith.constant 0 : i32
    %c0_i32_2 = arith.constant 0 : i32
    return %c0_i32, %c0_i32_0, %c0_i32_1 : i32, i32, i32
  }
  func.func @transform_5(%arg0: i32, %arg1: i32) -> (i32, i32, i32) {
    %c0_i32 = arith.constant 0 : i32
    %c0_i32_0 = arith.constant 0 : i32
    %c0_i32_1 = arith.constant 0 : i32
    %c0_i32_2 = arith.constant 0 : i32
    return %c0_i32, %c0_i32_0, %c0_i32_1 : i32, i32, i32
  }
  func.func @transform_6(%arg0: i32, %arg1: i32) -> (i32, i32, i32) {
    %c0_i32 = arith.constant 0 : i32
    %c0_i32_0 = arith.constant 0 : i32
    %c0_i32_1 = arith.constant 0 : i32
    %c0_i32_2 = arith.constant 0 : i32
    return %c0_i32, %c0_i32_0, %c0_i32_1 : i32, i32, i32
  }
  func.func @transform_7(%arg0: i32, %arg1: i32) -> (i32, i32, i32) {
    %c0_i32 = arith.constant 0 : i32
    %c0_i32_0 = arith.constant 0 : i32
    %c0_i32_1 = arith.constant 0 : i32
    %c0_i32_2 = arith.constant 0 : i32
    return %c0_i32, %c0_i32_0, %c0_i32_1 : i32, i32, i32
  }
  func.func @transform_8(%arg0: i32, %arg1: i32) -> (i32, i32, i32) {
    %c0_i32 = arith.constant 0 : i32
    %c0_i32_0 = arith.constant 0 : i32
    %c0_i32_1 = arith.constant 0 : i32
    %c0_i32_2 = arith.constant 0 : i32
    return %c0_i32, %c0_i32_0, %c0_i32_1 : i32, i32, i32
  }
  func.func @transform_9(%arg0: i32, %arg1: i32) -> (i32, i32) {
    %c0_i32 = arith.constant 0 : i32
    %c0_i32_0 = arith.constant 0 : i32
    %c0_i32_1 = arith.constant 0 : i32
    return %c0_i32, %c0_i32_0 : i32, i32
  }
  func.func @transform_10(%arg0: i32, %arg1: i32) -> (i32, i32) {
    %c0_i32 = arith.constant 0 : i32
    %c0_i32_0 = arith.constant 0 : i32
    %c0_i32_1 = arith.constant 0 : i32
    return %c0_i32, %c0_i32_0 : i32, i32
  }
  func.func @transform_11(%arg0: i32, %arg1: i32) -> (i32, i32) {
    %c0_i32 = arith.constant 0 : i32
    %c0_i32_0 = arith.constant 0 : i32
    %c0_i32_1 = arith.constant 0 : i32
    return %c0_i32, %c0_i32_0 : i32, i32
  }
  func.func @transform_12(%arg0: i32, %arg1: i32) -> (i32, i32) {
    %c0_i32 = arith.constant 0 : i32
    %c0_i32_0 = arith.constant 0 : i32
    %c0_i32_1 = arith.constant 0 : i32
    return %c0_i32, %c0_i32_0 : i32, i32
  }
  func.func @transform_13(%arg0: i32, %arg1: i32) -> (i32, i32) {
    %c0_i32 = arith.constant 0 : i32
    %c0_i32_0 = arith.constant 0 : i32
    %c0_i32_1 = arith.constant 0 : i32
    return %c0_i32, %c0_i32_0 : i32, i32
  }
  func.func @transform_14(%arg0: i32, %arg1: i32) -> (i32, i32) {
    %c0_i32 = arith.constant 0 : i32
    %c0_i32_0 = arith.constant 0 : i32
    %c0_i32_1 = arith.constant 0 : i32
    return %c0_i32, %c0_i32_0 : i32, i32
  }
  func.func @transform_15(%arg0: i32, %arg1: i32) -> (i32, i32, i32) {
    %c0_i32 = arith.constant 0 : i32
    %c0_i32_0 = arith.constant 0 : i32
    return %arg0, %arg1, %c0_i32 : i32, i32, i32
  }
}

</mosaic_0001>

<bundles_post_ra>
// kernel: tpu_custom_call.1
= control target key start
LH: loop header
LB: loop body
LE: loop exit
PB: predicated region body
PF: predicated region fallthrough
CT: control target
= control target key end

     0   :  { %s4682_s0 = inlined_call_operand.hbm [shape: bf16[2,8,32], index: 0, kind: input, shape index: {}]   ;;  %s4683_s1 = inlined_call_operand.hbm [shape: bf16[2,16,32], index: 1, kind: input, shape index: {}]   ;;  %s4684_s2 = inlined_call_operand.hbm [shape: bf16[4,32,8], index: 2, kind: input, shape index: {}]   ;;  %s4685_s3 = inlined_call_operand.hbm [shape: f32[4,1,8], index: 3, kind: input, shape index: {}]   ;;  %s4686_s4 = inlined_call_operand.hbm [shape: bf16[4,32,8], index: 4, kind: input, shape index: {}]   ;;  %s4687_s5 = inlined_call_operand.hbm [shape: f32[4,1,8], index: 5, kind: input, shape index: {}]   ;;  %s4688_s6 = inlined_call_operand.hbm [shape: bf16[4,32,8], index: 6, kind: input, shape index: {}]   ;;  %s4689_s7 = inlined_call_operand.hbm [shape: f32[4,1,8], index: 7, kind: input, shape index: {}]   ;;  %s4690_s8 = inlined_call_operand.hbm [shape: bf16[4,8,32], index: 8, kind: input, shape index: {}]   ;;  %s4691_s9 = inlined_call_operand.hbm [shape: f32[1,32], index: 9, kind: input, shape index: {}]   ;;  %s4692_s10 = inlined_call_operand.hbm [shape: bf16[32,64], index: 10, kind: input, shape index: {}]   ;;  %s4693_s11 = inlined_call_operand.hbm [shape: bf16[32,64], index: 11, kind: input, shape index: {}]   ;;  %s4694_s12 = inlined_call_operand.hbm [shape: f32[1,64], index: 12, kind: input, shape index: {}]   ;;  %s4695_s13 = inlined_call_operand.hbm [shape: bf16[64,32], index: 13, kind: input, shape index: {}]   ;;  %s4696_s14 = inlined_call_operand.hbm [shape: f32[1,32], index: 14, kind: input, shape index: {}]   ;;  %s4697_s15 = inlined_call_operand.hbm [shape: f32[2,8,32], index: 15, kind: output, shape index: {}]  }
   0x1   :  { %4713 = sst [smem:[#allocation43_spill]] %s4682_s0 }
   0x2   :  { %4714 = sst [smem:[#allocation44_spill]] %s4683_s1 }
   0x3   :  { %4715 = sst [smem:[#allocation45_spill]] %s4684_s2 }
   0x4   :  { %4716 = sst [smem:[#allocation46_spill]] %s4685_s3 }
   0x5   :  { %4717 = sst [smem:[#allocation47_spill]] %s4686_s4 }
   0x6   :  { %4718 = sst [smem:[#allocation48_spill]] %s4687_s5 }
   0x7   :  { %4719 = sst [smem:[#allocation49_spill]] %s4688_s6 }
   0x8   :  { %4720 = sst [smem:[#allocation50_spill]] %s4689_s7 }
   0x9   :  { %4721 = sst [smem:[#allocation51_spill]] %s4690_s8 }
   0xa   :  { %4722 = sst [smem:[#allocation52_spill]] %s4691_s9 }
   0xb   :  { %4723 = sst [smem:[#allocation53_spill]] %s4692_s10 }
   0xc   :  { %4724 = sst [smem:[#allocation54_spill]] %s4693_s11 }
   0xd   :  { %4725 = sst [smem:[#allocation55_spill]] %s4697_s15 }
   0xe   :  { %20 = vsyncpa [#allocation4], 0 }
   0xf   :  { %22 = vsyncpa [#allocation4 + $0x1], 0 }
  0x10   :  { %23 = vsyncpa [#allocation7], 0 }
  0x11   :  { %25 = vsyncpa [#allocation7 + $0x1], 0 }
  0x12   :  { %26 = vsyncpa [#allocation10], 0 }
  0x13   :  { %27 = vsyncpa [#allocation13], 0 }
  0x14   :  { %28 = vsyncpa [#allocation16], 0 }
  0x15   :  { %29 = vsyncpa [#allocation19], 0 }
  0x16   :  { %30 = vsyncpa [#allocation22], 0 }
  0x17   :  { %31 = vsyncpa [#allocation25], 0 }
  0x18   :  { %32 = vsyncpa [#allocation5], 0 }
  0x19   :  { %34 = vsyncpa [#allocation5 + $0x1], 0  ;;  %s3919_s18 = smov 0   ;;  %s3921_s19 = smov 0  }
  0x1a   :  { %s3923_s20 = smov 0   ;;  %s3925_s21 = smov 0  }
  0x1b   :  { %s3927_s22 = smov 0   ;;  %s3929_s23 = smov 0  }
  0x1c LB: > { %4726 = sst [smem:[#allocation38_spill]] %s3795_s18  ;;  %s3950_s24 = sadd.s32 4294967295, %s3815_s23   ;;  %s3815_s23 = sphi %s3929_s23, %s40_s23   ;;  %s3811_s22 = sphi %s3927_s22, %s4788_s22   ;;  %s3807_s21 = sphi %s3925_s21, %s4787_s21   ;;  %s3803_s20 = sphi %s3923_s20, %s4786_s20   ;;  %s3799_s19 = sphi %s3921_s19, %s4785_s19   ;;  %s3795_s18 = sphi %s3919_s18, %s4784_s18  }
  0x1d   : > { %4727 = sst [smem:[#allocation39_spill]] %s3799_s19  ;;  %p2640_p0 = scmp.ge.s32.totalorder %s3815_s23, 1 }
  0x1e   : > { %4728 = sst [smem:[#allocation40_spill]] %s3807_s21  ;;  %p4710_p1 = scmp.eq.s32.totalorder %s3950_s24, 0 }
  0x1f   : > { %4729 = sst [smem:[#allocation41_spill]] %s3950_s24  ;;  %p412_p2 = scmp.lt.s32.totalorder %s3815_s23, 3 }
  0x20   : > { %s3817_s26 = smov [#allocation8]   ;;  %s3818_s29 = smov [#allocation9]  }
  0x21   : > { %p3955_p3 = pnand %p2640_p0, %p412_p2  ;;  %s424_s27 = sshll.u32 %s3817_s26, 4  ;;  %s3959_s27 = int_to_ptr.vmem [resolvable:$true] %s424_s27 }
  0x22   : > { %s437_s30 = sshll.u32 %s3818_s29, 4  ;;  %s4733_s2 = sld [smem:[#allocation45_spill]]  ;;  %s3970_s30 = int_to_ptr.vmem [resolvable:$true] %s437_s30 }
  0x23   : > { %s4730_s25 = scalar_select %p3955_p3, 1, 0 }
  0x24   : > { %p3082_p4 = pneg %p3955_p3 }
  0x25   : > { %4731 = sst [smem:[#allocation42_spill]] %s4730_s25 }
  0x26   : > { %p3966_p6 = pnand %p3082_p4, %p4710_p1 }
  0x28   : > { %s3277_s15 = scalar_lea.hbm %s4733_s2, 1024  ;;  %p3980_p8 = pneg %p3966_p6 }
  0x29   : > { %p3278_p7 = scmp.ne.s32.totalorder %s4733_s2, %s3277_s15  ;;  %p3284_p11 = scmp.lt.u32.totalorder %s3277_s15, %s4733_s2 }
  0x2b   : > { %p3280_p9 = pnand %p3980_p8, %p3278_p7 }
  0x2d   : > { %p3281_p10 = pneg %p3280_p9 }
  0x2f   : > { %p3286_p12 = pnand %p3284_p11, %p3281_p10 }
  0x31   : > { %3289 = shalt.err (!%p3286_p12)
}
  0x32   : > { %s3290_s21 = scalar_lea.vmem %s3959_s27, 1024  ;;  %p3298_p4 = scmp.lt.s32.totalorder %s3959_s27, %s3959_s27 }
  0x33   : > { %p3291_p13 = scmp.ne.s32.totalorder %s3959_s27, %s3290_s21  ;;  %p3299_p5 = scmp.lt.s32.totalorder %s3290_s21, %s3290_s21 }
  0x35   : > { %p3293_p0 = pnand %p3291_p13, %p3980_p8  ;;  %p3300_p7 = por %p3299_p5, %p3298_p4 }
  0x37   : > { %p3294_p2 = pneg %p3293_p0 }
  0x39   : > { %p3301_p9 = pnand %p3300_p7, %p3294_p2 }
  0x3b   : > { %3304 = shalt.err (!%p3301_p9)
}
  0x3c   : > { %s4706_s16 = smov 64   ;;  %s4708_s1 = smov 4  }
  0x3d   : > { %3085 = dma.hbm_to_vmem [thread:$0]  (!%p3966_p6), %s4733_s2, 1024, %s3959_s27, [#allocation7], %s4706_s16, %s4706_s16, %s4708_s1  }
  0x3e   : > { %s4735_s3 = sld [smem:[#allocation46_spill]] }
  0x44   : > { %s3305_s21 = scalar_lea.hbm %s4735_s3, 64 }
  0x45   : > { %p3306_p5 = scmp.ne.s32.totalorder %s4735_s3, %s3305_s21  ;;  %p3312_p12 = scmp.lt.u32.totalorder %s3305_s21, %s4735_s3 }
  0x47   : > { %p3308_p10 = pnand %p3306_p5, %p3980_p8 }
  0x49   : > { %p3309_p11 = pneg %p3308_p10 }
  0x4b   : > { %p3314_p13 = pnand %p3312_p12, %p3309_p11 }
  0x4d   : > { %3317 = shalt.err (!%p3314_p13)
}
  0x4e   : > { %s3318_s27 = scalar_lea.vmem %s3970_s30, 64  ;;  %p3326_p7 = scmp.lt.s32.totalorder %s3970_s30, %s3970_s30 }
  0x4f   : > { %p3319_p0 = scmp.ne.s32.totalorder %s3970_s30, %s3318_s27  ;;  %p3327_p9 = scmp.lt.s32.totalorder %s3318_s27, %s3318_s27 }
  0x51   : > { %p3321_p2 = pnand %p3319_p0, %p3980_p8  ;;  %p3328_p5 = por %p3327_p9, %p3326_p7 }
  0x53   : > { %p3322_p4 = pneg %p3321_p2 }
  0x55   : > { %p3329_p10 = pnand %p3328_p5, %p3322_p4 }
  0x57   : > { %3332 = shalt.err (!%p3329_p10)
}
  0x58   : > { %s3821_s0 = smov 16   ;;  %s3822_s18 = smov 1  }
  0x59   : > { %3088 = dma.hbm_to_vmem [thread:$0]  (!%p3966_p6), %s4735_s3, 64, %s3970_s30, [#allocation10], %s3821_s0, %s3821_s0, %s3822_s18  }
  0x5a   : > { %s3823_s15 = smov [#allocation12]   ;;  %s3824_s26 = smov [#allocation15]  }
  0x5b   : > { %s463_s17 = sshll.u32 %s3823_s15, 4  ;;  %s489_s29 = sshll.u32 %s3824_s26, 4  ;;  %s464_s17 = int_to_ptr.vmem [resolvable:$true] %s463_s17  ;;  %s4030_s29 = int_to_ptr.vmem [resolvable:$true] %s489_s29 }
  0x5c   : > { %s4736_s5 = sld [smem:[#allocation48_spill]] }
  0x62   : > { %s3333_s16 = scalar_lea.hbm %s4736_s5, 64 }
  0x63   : > { %p3334_p11 = scmp.ne.s32.totalorder %s4736_s5, %s3333_s16  ;;  %p3340_p0 = scmp.lt.u32.totalorder %s3333_s16, %s4736_s5 }
  0x65   : > { %p3336_p12 = pnand %p3334_p11, %p3980_p8 }
  0x67   : > { %p3337_p13 = pneg %p3336_p12 }
  0x69   : > { %p3342_p2 = pnand %p3340_p0, %p3337_p13 }
  0x6b   : > { %3345 = shalt.err (!%p3342_p2)
}
  0x6c   : > { %s3346_s24 = scalar_lea.vmem %s464_s17, 64  ;;  %p3354_p5 = scmp.lt.s32.totalorder %s464_s17, %s464_s17 }
  0x6d   : > { %p3347_p4 = scmp.ne.s32.totalorder %s464_s17, %s3346_s24  ;;  %p3355_p10 = scmp.lt.s32.totalorder %s3346_s24, %s3346_s24 }
  0x6f   : > { %p3349_p7 = pnand %p3347_p4, %p3980_p8  ;;  %p3356_p1 = por %p3355_p10, %p3354_p5 }
  0x71   : > { %p3350_p9 = pneg %p3349_p7 }
  0x73   : > { %p3357_p3 = pnand %p3356_p1, %p3350_p9 }
  0x75   : > { %3360 = shalt.err (!%p3357_p3)
}
  0x76   : > { %3094 = dma.hbm_to_vmem [thread:$0]  (!%p3966_p6), %s4736_s5, 64, %s464_s17, [#allocation13], %s3821_s0, %s3821_s0, %s3822_s18  }
  0x77   : > { %s4737_s7 = sld [smem:[#allocation50_spill]] }
  0x7d   : > { %s3361_s26 = scalar_lea.hbm %s4737_s7, 64 }
  0x7e   : > { %p3362_p11 = scmp.ne.s32.totalorder %s4737_s7, %s3361_s26  ;;  %p3368_p12 = scmp.lt.u32.totalorder %s3361_s26, %s4737_s7 }
  0x80   : > { %p3364_p1 = pnand %p3362_p11, %p3980_p8 }
  0x82   : > { %p3365_p3 = pneg %p3364_p1 }
  0x84   : > { %p3370_p13 = pnand %p3368_p12, %p3365_p3 }
  0x86   : > { %3373 = shalt.err (!%p3370_p13)
}
  0x87   : > { %s3374_s17 = scalar_lea.vmem %s4030_s29, 64  ;;  %p3382_p7 = scmp.lt.s32.totalorder %s4030_s29, %s4030_s29 }
  0x88   : > { %p3375_p0 = scmp.ne.s32.totalorder %s4030_s29, %s3374_s17  ;;  %p3383_p9 = scmp.lt.s32.totalorder %s3374_s17, %s3374_s17 }
  0x8a   : > { %p3377_p2 = pnand %p3375_p0, %p3980_p8  ;;  %p3384_p5 = por %p3383_p9, %p3382_p7 }
  0x8c   : > { %p3378_p4 = pneg %p3377_p2 }
  0x8e   : > { %p3385_p10 = pnand %p3384_p5, %p3378_p4 }
  0x90   : > { %3388 = shalt.err (!%p3385_p10)
}
  0x91   : > { %3100 = dma.hbm_to_vmem [thread:$0]  (!%p3966_p6), %s4737_s7, 64, %s4030_s29, [#allocation16], %s3821_s0, %s3821_s0, %s3822_s18  }
  0x92   : > { %s3825_s16 = smov [#allocation18]   ;;  %s3826_s15 = smov [#allocation21]  }
  0x93   : > { %s516_s1 = sshll.u32 %s3825_s16, 4  ;;  %s539_s26 = sshll.u32 %s3826_s15, 4  ;;  %s517_s1 = int_to_ptr.vmem [resolvable:$true] %s516_s1  ;;  %s4079_s26 = int_to_ptr.vmem [resolvable:$true] %s539_s26 }
  0x94   : > { %s4738_s9 = sld [smem:[#allocation52_spill]] }
  0x9a   : > { %s3389_s19 = scalar_lea.hbm %s4738_s9, 16 }
  0x9b   : > { %p3390_p11 = scmp.ne.s32.totalorder %s4738_s9, %s3389_s19  ;;  %p3396_p12 = scmp.lt.u32.totalorder %s3389_s19, %s4738_s9 }
  0x9d   : > { %p3392_p1 = pnand %p3390_p11, %p3980_p8 }
  0x9f   : > { %p3393_p3 = pneg %p3392_p1 }
  0xa1   : > { %p3398_p13 = pnand %p3396_p12, %p3393_p3 }
  0xa3   : > { %3401 = shalt.err (!%p3398_p13)
}
  0xa4   : > { %s3402_s18 = scalar_lea.vmem %s517_s1, 16  ;;  %s3409_s29 = scalar_lea.vmem %s517_s1, 32 }
  0xa5   : > { %p3403_p0 = scmp.ne.s32.totalorder %s517_s1, %s3402_s18  ;;  %p3410_p7 = scmp.lt.s32.totalorder %s517_s1, %s517_s1 }
  0xa6   : > { %p3411_p9 = scmp.lt.s32.totalorder %s3409_s29, %s3402_s18 }
  0xa7   : > { %p3405_p2 = pnand %p3403_p0, %p3980_p8 }
  0xa8   : > { %p3412_p5 = por %p3411_p9, %p3410_p7 }
  0xa9   : > { %p3406_p4 = pneg %p3405_p2 }
  0xab   : > { %p3413_p10 = pnand %p3412_p5, %p3406_p4 }
  0xad   : > { %3416 = shalt.err (!%p3413_p10)
}
  0xae   : > { %3106 = dma.hbm_to_vmem [thread:$0]  (!%p3966_p6), %s4738_s9, 16, %s517_s1, [#allocation19]  }
  0xaf   : > { %s4739_s11 = sld [smem:[#allocation54_spill]] }
  0xb5   : > { %s3417_s27 = scalar_lea.hbm %s4739_s11, 256 }
  0xb6   : > { %p3418_p11 = scmp.ne.s32.totalorder %s4739_s11, %s3417_s27  ;;  %p3424_p12 = scmp.lt.u32.totalorder %s3417_s27, %s4739_s11 }
  0xb8   : > { %p3420_p1 = pnand %p3418_p11, %p3980_p8 }
  0xba   : > { %p3421_p3 = pneg %p3420_p1 }
  0xbc   : > { %p3426_p13 = pnand %p3424_p12, %p3421_p3 }
  0xbe   : > { %3429 = shalt.err (!%p3426_p13)
}
  0xbf   : > { %s3430_s1 = scalar_lea.vmem %s4079_s26, 256  ;;  %p3438_p7 = scmp.lt.s32.totalorder %s4079_s26, %s4079_s26 }
  0xc0   : > { %p3431_p0 = scmp.ne.s32.totalorder %s4079_s26, %s3430_s1  ;;  %p3439_p9 = scmp.lt.s32.totalorder %s3430_s1, %s3430_s1 }
  0xc2   : > { %p3433_p2 = pnand %p3431_p0, %p3980_p8  ;;  %p3440_p5 = por %p3439_p9, %p3438_p7 }
  0xc4   : > { %p3434_p4 = pneg %p3433_p2 }
  0xc6   : > { %p3441_p10 = pnand %p3440_p5, %p3434_p4 }
  0xc8   : > { %3444 = shalt.err (!%p3441_p10)
}
  0xc9   : > { %s4740_s0 = smov 4   ;;  %s4741_s18 = smov 64  }
  0xca   : > { %3112 = dma.hbm_to_vmem [thread:$0]  (!%p3966_p6), %s4739_s11, 256, %s4079_s26, [#allocation22], %s4741_s18, %s4741_s18, %s4740_s0  }
  0xcb   : > { %s3827_s16 = smov [#allocation24]   ;;  %s3828_s21 = smov [#allocation11]  }
  0xcc   : > { %s563_s15 = sshll.u32 %s3827_s16, 4  ;;  %s450_s27 = sshll.u32 %s3828_s21, 4  ;;  %s564_s15 = int_to_ptr.vmem [resolvable:$true] %s563_s15  ;;  %s4125_s27 = int_to_ptr.vmem [resolvable:$true] %s450_s27 }
  0xcd   : > { %s3445_s17 = scalar_lea.hbm %s4695_s13, 512 }
  0xce   : > { %p3446_p11 = scmp.ne.s32.totalorder %s4695_s13, %s3445_s17  ;;  %p3452_p12 = scmp.lt.u32.totalorder %s3445_s17, %s4695_s13 }
  0xd0   : > { %p3448_p1 = pnand %p3446_p11, %p3980_p8 }
  0xd2   : > { %p3449_p3 = pneg %p3448_p1 }
  0xd4   : > { %p3454_p13 = pnand %p3452_p12, %p3449_p3 }
  0xd6   : > { %3457 = shalt.err (!%p3454_p13)
}
  0xd7   : > { %s3458_s2 = scalar_lea.vmem %s564_s15, 512  ;;  %p3466_p7 = scmp.lt.s32.totalorder %s564_s15, %s564_s15 }
  0xd8   : > { %p3459_p0 = scmp.ne.s32.totalorder %s564_s15, %s3458_s2  ;;  %p3467_p9 = scmp.lt.s32.totalorder %s3458_s2, %s3458_s2 }
  0xda   : > { %p3461_p2 = pnand %p3459_p0, %p3980_p8  ;;  %p3468_p5 = por %p3467_p9, %p3466_p7 }
  0xdc   : > { %p3462_p4 = pneg %p3461_p2 }
  0xde   : > { %p3469_p10 = pnand %p3468_p5, %p3462_p4 }
  0xe0   : > { %3472 = shalt.err (!%p3469_p10)
}
  0xe1   : > { %3118 = dma.hbm_to_vmem [thread:$0]  (!%p3966_p6), %s4695_s13, 512, %s564_s15, [#allocation25], %s4741_s18, %s4741_s18, %s4740_s0  }
  0xe2   : > { %s4742_s4 = sld [smem:[#allocation47_spill]] }
  0xe8   : > { %s3473_s17 = scalar_lea.hbm %s4742_s4, 1024 }
  0xe9   : > { %p3474_p11 = scmp.ne.s32.totalorder %s4742_s4, %s3473_s17  ;;  %p3480_p12 = scmp.lt.u32.totalorder %s3473_s17, %s4742_s4 }
  0xeb   : > { %p3476_p1 = pnand %p3474_p11, %p3980_p8 }
  0xed   : > { %p3477_p3 = pneg %p3476_p1 }
  0xef   : > { %p3482_p13 = pnand %p3480_p12, %p3477_p3 }
  0xf1   : > { %3485 = shalt.err (!%p3482_p13)
}
  0xf2   : > { %s3486_s15 = scalar_lea.vmem %s4125_s27, 1024  ;;  %p3494_p7 = scmp.lt.s32.totalorder %s4125_s27, %s4125_s27 }
  0xf3   : > { %p3487_p0 = scmp.ne.s32.totalorder %s4125_s27, %s3486_s15  ;;  %p3495_p9 = scmp.lt.s32.totalorder %s3486_s15, %s3486_s15 }
  0xf5   : > { %p3489_p2 = pnand %p3487_p0, %p3980_p8  ;;  %p3496_p5 = por %p3495_p9, %p3494_p7 }
  0xf7   : > { %p3490_p4 = pneg %p3489_p2 }
  0xf9   : > { %p3497_p10 = pnand %p3496_p5, %p3490_p4 }
  0xfb   : > { %3500 = shalt.err (!%p3497_p10)
}
  0xfc   : > { %3091 = dma.hbm_to_vmem [thread:$0]  (!%p3966_p6), %s4742_s4, 1024, %s4125_s27, [#allocation10], %s4741_s18, %s4741_s18, %s4740_s0  }
  0xfd   : > { %s3829_s21 = smov [#allocation14]   ;;  %s3830_s30 = smov [#allocation17]  }
  0xfe   : > { %s476_s19 = sshll.u32 %s3829_s21, 4  ;;  %s502_s17 = sshll.u32 %s3830_s30, 4  ;;  %s477_s19 = int_to_ptr.vmem [resolvable:$true] %s476_s19  ;;  %s4174_s17 = int_to_ptr.vmem [resolvable:$true] %s502_s17 }
  0xff   : > { %s4743_s6 = sld [smem:[#allocation49_spill]] }
 0x105   : > { %s3501_s29 = scalar_lea.hbm %s4743_s6, 1024 }
 0x106   : > { %p3502_p11 = scmp.ne.s32.totalorder %s4743_s6, %s3501_s29  ;;  %p3508_p12 = scmp.lt.u32.totalorder %s3501_s29, %s4743_s6 }
 0x108   : > { %p3504_p1 = pnand %p3502_p11, %p3980_p8 }
 0x10a   : > { %p3505_p3 = pneg %p3504_p1 }
 0x10c   : > { %p3510_p13 = pnand %p3508_p12, %p3505_p3 }
 0x10e   : > { %3513 = shalt.err (!%p3510_p13)
}
 0x10f   : > { %s3514_s16 = scalar_lea.vmem %s477_s19, 1024  ;;  %p3522_p7 = scmp.lt.s32.totalorder %s477_s19, %s477_s19 }
 0x110   : > { %p3515_p0 = scmp.ne.s32.totalorder %s477_s19, %s3514_s16  ;;  %p3523_p9 = scmp.lt.s32.totalorder %s3514_s16, %s3514_s16 }
 0x112   : > { %p3517_p2 = pnand %p3515_p0, %p3980_p8  ;;  %p3524_p5 = por %p3523_p9, %p3522_p7 }
 0x114   : > { %p3518_p4 = pneg %p3517_p2 }
 0x116   : > { %p3525_p10 = pnand %p3524_p5, %p3518_p4 }
 0x118   : > { %3528 = shalt.err (!%p3525_p10)
}
 0x119   : > { %3097 = dma.hbm_to_vmem [thread:$0]  (!%p3966_p6), %s4743_s6, 1024, %s477_s19, [#allocation13], %s4741_s18, %s4741_s18, %s4740_s0  }
 0x11a   : > { %s4744_s8 = sld [smem:[#allocation51_spill]] }
 0x120   : > { %s3529_s29 = scalar_lea.hbm %s4744_s8, 256 }
 0x121   : > { %p3530_p11 = scmp.ne.s32.totalorder %s4744_s8, %s3529_s29  ;;  %p3536_p12 = scmp.lt.u32.totalorder %s3529_s29, %s4744_s8 }
 0x123   : > { %p3532_p1 = pnand %p3530_p11, %p3980_p8 }
 0x125   : > { %p3533_p3 = pneg %p3532_p1 }
 0x127   : > { %p3538_p13 = pnand %p3536_p12, %p3533_p3 }
 0x129   : > { %3541 = shalt.err (!%p3538_p13)
}
 0x12a   : > { %s3542_s19 = scalar_lea.vmem %s4174_s17, 256  ;;  %p3550_p7 = scmp.lt.s32.totalorder %s4174_s17, %s4174_s17 }
 0x12b   : > { %p3543_p0 = scmp.ne.s32.totalorder %s4174_s17, %s3542_s19  ;;  %p3551_p9 = scmp.lt.s32.totalorder %s3542_s19, %s3542_s19 }
 0x12d   : > { %p3545_p2 = pnand %p3543_p0, %p3980_p8  ;;  %p3552_p5 = por %p3551_p9, %p3550_p7 }
 0x12f   : > { %p3546_p4 = pneg %p3545_p2 }
 0x131   : > { %p3553_p10 = pnand %p3552_p5, %p3546_p4 }
 0x133   : > { %3556 = shalt.err (!%p3553_p10)
}
 0x134   : > { %3103 = dma.hbm_to_vmem [thread:$0]  (!%p3966_p6), %s4744_s8, 256, %s4174_s17, [#allocation16], %s4741_s18, %s4741_s18, %s4740_s0  }
 0x135   : > { %s3831_s30 = smov [#allocation20]   ;;  %s3832_s1 = smov [#allocation23]  }
 0x136   : > { %s526_s24 = sshll.u32 %s3831_s30, 4  ;;  %s553_s29 = sshll.u32 %s3832_s1, 4  ;;  %s527_s24 = int_to_ptr.vmem [resolvable:$true] %s526_s24  ;;  %s4223_s29 = int_to_ptr.vmem [resolvable:$true] %s553_s29 }
 0x137   : > { %s4745_s10 = sld [smem:[#allocation53_spill]] }
 0x13d   : > { %s3557_s2 = scalar_lea.hbm %s4745_s10, 256 }
 0x13e   : > { %p3558_p11 = scmp.ne.s32.totalorder %s4745_s10, %s3557_s2  ;;  %p3564_p12 = scmp.lt.u32.totalorder %s3557_s2, %s4745_s10 }
 0x140   : > { %p3560_p1 = pnand %p3558_p11, %p3980_p8 }
 0x142   : > { %p3561_p3 = pneg %p3560_p1 }
 0x144   : > { %p3566_p13 = pnand %p3564_p12, %p3561_p3 }
 0x146   : > { %3569 = shalt.err (!%p3566_p13)
}
 0x147   : > { %s3570_s21 = scalar_lea.vmem %s527_s24, 256  ;;  %p3578_p7 = scmp.lt.s32.totalorder %s527_s24, %s527_s24 }
 0x148   : > { %p3571_p0 = scmp.ne.s32.totalorder %s527_s24, %s3570_s21  ;;  %p3579_p9 = scmp.lt.s32.totalorder %s3570_s21, %s3570_s21 }
 0x14a   : > { %p3573_p2 = pnand %p3571_p0, %p3980_p8  ;;  %p3580_p5 = por %p3579_p9, %p3578_p7 }
 0x14c   : > { %p3574_p4 = pneg %p3573_p2 }
 0x14e   : > { %p3581_p10 = pnand %p3580_p5, %p3574_p4 }
 0x150   : > { %3584 = shalt.err (!%p3581_p10)
}
 0x151   : > { %3109 = dma.hbm_to_vmem [thread:$0]  (!%p3966_p6), %s4745_s10, 256, %s527_s24, [#allocation19], %s4741_s18, %s4741_s18, %s4740_s0  }
 0x152   : > { %s3585_s2 = scalar_lea.hbm %s4694_s12, 16 }
 0x153   : > { %p3586_p11 = scmp.ne.s32.totalorder %s4694_s12, %s3585_s2  ;;  %p3592_p12 = scmp.lt.u32.totalorder %s3585_s2, %s4694_s12 }
 0x155   : > { %p3588_p1 = pnand %p3586_p11, %p3980_p8 }
 0x157   : > { %p3589_p3 = pneg %p3588_p1 }
 0x159   : > { %p3594_p13 = pnand %p3592_p12, %p3589_p3 }
 0x15b   : > { %3597 = shalt.err (!%p3594_p13)
}
 0x15c   : > { %s3598_s24 = scalar_lea.vmem %s4223_s29, 16  ;;  %s3605_s21 = scalar_lea.vmem %s4223_s29, 32 }
 0x15d   : > { %p3599_p0 = scmp.ne.s32.totalorder %s4223_s29, %s3598_s24  ;;  %p3606_p7 = scmp.lt.s32.totalorder %s4223_s29, %s4223_s29 }
 0x15e   : > { %p3607_p9 = scmp.lt.s32.totalorder %s3605_s21, %s3598_s24 }
 0x15f   : > { %p3601_p2 = pnand %p3599_p0, %p3980_p8 }
 0x160   : > { %p3608_p5 = por %p3607_p9, %p3606_p7 }
 0x161   : > { %p3602_p4 = pneg %p3601_p2 }
 0x163   : > { %p3609_p10 = pnand %p3608_p5, %p3602_p4 }
 0x165   : > { %3612 = shalt.err (!%p3609_p10)
}
 0x166   : > { %3115 = dma.hbm_to_vmem [thread:$0]  (!%p3966_p6), %s4694_s12, 16, %s4223_s29, [#allocation22]  }
 0x167   : > { %s3833_s26 = smov [#allocation26]   ;;  %s3613_s19 = scalar_lea.hbm %s4696_s14, 16 }
 0x168   : > { %s577_s15 = sshll.u32 %s3833_s26, 4  ;;  %p3614_p11 = scmp.ne.s32.totalorder %s4696_s14, %s3613_s19  ;;  %s578_s15 = int_to_ptr.vmem [resolvable:$true] %s577_s15 }
 0x169   : > { %p3620_p12 = scmp.lt.u32.totalorder %s3613_s19, %s4696_s14 }
 0x16a   : > { %p3616_p1 = pnand %p3614_p11, %p3980_p8 }
 0x16c   : > { %p3617_p3 = pneg %p3616_p1 }
 0x16e   : > { %p3622_p13 = pnand %p3620_p12, %p3617_p3 }
 0x170   : > { %3625 = shalt.err (!%p3622_p13)
}
 0x171   : > { %s3626_s29 = scalar_lea.vmem %s578_s15, 16  ;;  %s3633_s30 = scalar_lea.vmem %s578_s15, 32 }
 0x172   : > { %p3627_p0 = scmp.ne.s32.totalorder %s578_s15, %s3626_s29  ;;  %p3634_p7 = scmp.lt.s32.totalorder %s578_s15, %s578_s15 }
 0x173   : > { %p3635_p9 = scmp.lt.s32.totalorder %s3633_s30, %s3626_s29 }
 0x174   : > { %p3629_p2 = pnand %p3627_p0, %p3980_p8 }
 0x175   : > { %p3636_p5 = por %p3635_p9, %p3634_p7 }
 0x176   : > { %p3630_p4 = pneg %p3629_p2 }
 0x178   : > { %p3637_p10 = pnand %p3636_p5, %p3630_p4 }
 0x17a   : > { %3640 = shalt.err (!%p3637_p10)
}
 0x17b   : > { %s4746_s2 = sld [smem:[#allocation39_spill]]  ;;  %s4747_s25 = sld [smem:[#allocation38_spill]] }
 0x17c   : > { %s4748_s27 = sld [smem:[#allocation41_spill]]  ;;  %s2639_s19 = sadd.s32 4294967294, %s3815_s23  }
 0x17d   : > { %3121 = dma.hbm_to_vmem [thread:$0]  (!%p3966_p6), %s4696_s14, 16, %s578_s15, [#allocation25]  }
 0x17e   : > { %s52_s16 = sadd.s32 1, %s3811_s22  ;;  %s61_s28 = sadd.s32 1, %s3803_s20 }
 0x17f   : > { %p54_p8 = scmp.ge.s32.totalorder %s52_s16, 2  ;;  %p69_p1 = scmp.eq.s32.totalorder %s3815_s23, 0 }
 0x180   : > { %p405_p4 = scmp.eq.s32.totalorder %s2639_s19, 1  ;;  %p3146_p9 = scmp.lt.s32.totalorder %s3815_s23, 2 }
 0x181   : > { %p68_p11 = scmp.ne.s32.totalorder %s3803_s20, %s4746_s2  ;;  %p74_p3 = scmp.ne.s32.totalorder %s4746_s2, %s4747_s25 }
 0x182   : > { %s4790_s16 = smov (%p54_p8, %s52_s16), 0  ;;  %p4750_p13 = scmp.eq.s32.totalorder %s4748_s27, 0 }
 0x183   : > { %p4298_p12 = por %p69_p1, %p68_p11  ;;  %s56_s24 = ssub.s32 %s3811_s22, %s4790_s16 }
 0x184   : > { %p4304_p6 = por %p4750_p13, %p74_p3  ;;  %p399_p0 = scmp.eq.s32.totalorder %s4748_s27, 1 }
 0x185   : > { %p59_p2 = scmp.eq.s32.totalorder %s56_s24, 0  ;;  %p4319_p5 = por %p405_p4, %p74_p3 }
 0x186   : > { %p4311_p7 = por %p399_p0, %p68_p11  ;;  %s4324_s1 = sand.u32 1, %s3803_s20  }
 0x187   : > { %s4317_s29 = scalar_select %p59_p2, %s3803_s20, %s61_s28  }
 0x188   : > { %s4752_s21 = scalar_select %p4311_p7, 1, 0 }
 0x189   : > { %s4753_s30 = scalar_select %p4319_p5, 1, 0 }
 0x18a   : > { %s2655_s26 = sshll.u32 %s4324_s1, 2  ;;  %s2656_s2 = sshll.u32 %s3811_s22, 6 }
 0x18b   : > { %s4754_s19 = sld [smem:[#allocation43_spill]]  ;;  %s592_s28 = scalar_lea.vmem [#allocation3], %s2655_s26 }
 0x18c   : > { %s600_s4 = sshll.u32 %s592_s28, 4  ;;  %p4337_p10 = pnand %p3146_p9, %p4298_p12  ;;  %s4333_s4 = int_to_ptr.vmem [resolvable:$true] %s600_s4 }
 0x18d   : > { %s2657_s6 = sshll.u32 %s4324_s1, 3  ;;  %s589_s25 = scalar_lea.sflag [#allocation4], %s4324_s1 }
 0x18e   : > { %p3643_p11 = pneg %p4337_p10 }
 0x191   : > { %s4755_s24 = smov %s4754_s19  ;;  %s4331_s3 = scalar_lea.hbm %s4754_s19, %s2656_s2 }
 0x192   : > { %s3641_s2 = scalar_lea.hbm %s4331_s3, 64  ;;  %s3646_s17 = scalar_lea.hbm %s4755_s24, 128 }
 0x193   : > { %p3642_p8 = scmp.ne.s32.totalorder %s4331_s3, %s3641_s2  ;;  %p3647_p12 = scmp.lt.u32.totalorder %s4331_s3, %s4755_s24 }
 0x194   : > { %p3648_p13 = scmp.lt.u32.totalorder %s3646_s17, %s3641_s2  ;;  %p3650_p2 = scmp.lt.u32.totalorder %s3641_s2, %s4331_s3 }
 0x195   : > { %p3644_p1 = pnand %p3643_p11, %p3642_p8 }
 0x196   : > { %p3649_p0 = por %p3648_p13, %p3647_p12 }
 0x197   : > { %p3645_p3 = pneg %p3644_p1 }
 0x198   : > { %p3651_p4 = por %p3650_p2, %p3649_p0 }
 0x19a   : > { %p3652_p9 = pnand %p3651_p4, %p3645_p3 }
 0x19c   : > { %3655 = shalt.err (!%p3652_p9)
}
 0x19d   : > { %s3656_s7 = scalar_lea.vmem %s4333_s4, 64  ;;  %s3834_s26 = smov [#allocation3]  }
 0x19e   : > { %p3657_p8 = scmp.ne.s32.totalorder %s4333_s4, %s3656_s7  ;;  %s3661_s27 = sshll.u32 %s3834_s26, 4  ;;  %s3662_s27 = int_to_ptr.vmem [resolvable:$false] %s3661_s27 }
 0x19f   : > { %s3663_s19 = scalar_lea.vmem %s3662_s27, 128  ;;  %p3664_p7 = scmp.lt.s32.totalorder %s4333_s4, %s3662_s27 }
 0x1a0   : > { %p3659_p1 = pnand %p3657_p8, %p3643_p11  ;;  %p3665_p12 = scmp.lt.s32.totalorder %s3663_s19, %s3656_s7 }
 0x1a2   : > { %p3660_p5 = pneg %p3659_p1  ;;  %p3666_p13 = por %p3665_p12, %p3664_p7 }
 0x1a4   : > { %p3667_p0 = pnand %p3666_p13, %p3660_p5 }
 0x1a6   : > { %3670 = shalt.err (!%p3667_p0)
}
 0x1a7   : > { %3125 = dma.hbm_to_vmem [thread:$0]  (!%p4337_p10), %s4331_s3, 64, %s4333_s4, %s589_s25  }
 0x1a8   : > { %s611_s2 = scalar_lea.vmem [#allocation6], %s2657_s6  ;;  %s607_s28 = sand.u32 1, %s3815_s23  }
 0x1a9   : > { %s618_s17 = sshll.u32 %s611_s2, 4  ;;  %s4757_s26 = sshll.u32 %s3811_s22, 7  ;;  %s4372_s17 = int_to_ptr.vmem [resolvable:$true] %s618_s17 }
 0x1aa   : > { %s4758_s19 = sld [smem:[#allocation44_spill]]  ;;  %s4381_s10 = scalar_lea.sflag [#allocation7], %s607_s28 }
 0x1b0   : > { %s4759_s8 = smov %s4758_s19  ;;  %s4379_s9 = scalar_lea.hbm %s4758_s19, %s4757_s26 }
 0x1b1   : > { %s3671_s11 = scalar_lea.hbm %s4379_s9, 128  ;;  %s3676_s6 = scalar_lea.hbm %s4759_s8, 256 }
 0x1b2   : > { %p3672_p7 = scmp.ne.s32.totalorder %s4379_s9, %s3671_s11  ;;  %p3677_p2 = scmp.lt.u32.totalorder %s4379_s9, %s4759_s8 }
 0x1b3   : > { %p3678_p4 = scmp.lt.u32.totalorder %s3676_s6, %s3671_s11  ;;  %p3680_p8 = scmp.lt.u32.totalorder %s3671_s11, %s4379_s9 }
 0x1b4   : > { %p3674_p5 = pnand %p3672_p7, %p3643_p11 }
 0x1b5   : > { %p3679_p9 = por %p3678_p4, %p3677_p2 }
 0x1b6   : > { %p3675_p3 = pneg %p3674_p5 }
 0x1b7   : > { %p3681_p1 = por %p3680_p8, %p3679_p9 }
 0x1b9   : > { %p3682_p12 = pnand %p3681_p1, %p3675_p3 }
 0x1bb   : > { %3685 = shalt.err (!%p3682_p12)
}
 0x1bc   : > { %s3686_s2 = scalar_lea.vmem %s4372_s17, 128  ;;  %s3835_s28 = smov [#allocation6]  }
 0x1bd   : > { %p3687_p13 = scmp.ne.s32.totalorder %s4372_s17, %s3686_s2  ;;  %s3691_s26 = sshll.u32 %s3835_s28, 4  ;;  %s3692_s26 = int_to_ptr.vmem [resolvable:$false] %s3691_s26 }
 0x1be   : > { %s3693_s7 = scalar_lea.vmem %s3692_s26, 256  ;;  %p3694_p5 = scmp.lt.s32.totalorder %s4372_s17, %s3692_s26 }
 0x1bf   : > { %p3689_p0 = pnand %p3687_p13, %p3643_p11  ;;  %p3695_p2 = scmp.lt.s32.totalorder %s3693_s7, %s3686_s2 }
 0x1c1   : > { %p3690_p7 = pneg %p3689_p0  ;;  %p3696_p4 = por %p3695_p2, %p3694_p5 }
 0x1c3   : > { %p3697_p9 = pnand %p3696_p4, %p3690_p7 }
 0x1c5   : > { %3700 = shalt.err (!%p3697_p9)
}
 0x1c6   : > { %3128 = dma.hbm_to_vmem [thread:$0]  (!%p4337_p10), %s4379_s9, 128, %s4372_s17, %s4381_s10, %s4741_s18, %s4741_s18, %s4740_s0  }
 0x1c7   : > { %s4760_s11 = sld [smem:[#allocation42_spill]] }
 0x1cd   : > { %p4761_p11 = scmp.ne.s32.totalorder %s4760_s11, 0 }
 0x1ce   : > { %s4762_s27 = sld [smem:[#allocation39_spill]] (!%p4761_p11) }
 0x1cf   : > { %630 = sbr.rel (%p4761_p11) target bundleno = 5099 (0x13eb), region = 80 }
 0x1d4   : > { %s4413_s19 = sand.u32 (!%p4761_p11), 1, %s4762_s27  }
 0x1d5   : > { %s2661_s3 = sshll.u32 (!%p4761_p11), %s4413_s19, 2  ;;  %s633_s4 = scalar_lea.sflag (!%p4761_p11), [#allocation4], %s4413_s19 }
 0x1d6   : > { %s4417_s6 = scalar_lea.vmem [#allocation3], %s2661_s3 }
 0x1d7   : > { %3754 = dma.done.wait (%p4304_p6), %s633_s4, 64  }
 0x1d8   : > { %3756 = vsyncadd (%p4304_p6), %s633_s4, 4294967232  ;;  %s4763_s5 = sld [smem:[#allocation41_spill]]  ;;  %s2662_s10 = sshll.u32 %s4413_s19, 3 }
 0x1d9   : > { %s4427_s18 = scalar_lea.vmem [#allocation6], %s2662_s10 }
 0x1de   : > { %s641_s9 = sand.u32 1, %s4763_s5  }
 0x1df   : > { %s642_s0 = scalar_lea.sflag [#allocation7], %s641_s9 }
 0x1e0   : > { %3758 = dma.done.wait (%p4304_p6), %s642_s0, 128  }
 0x1e1   : > { %3760 = vsyncadd (%p4304_p6), %s642_s0, 4294967168  ;;  %p4764_p10 = scmp.eq.s32.totalorder %s4763_s5, 0 }
 0x1e3   : > { %3762 = dma.done.wait (%p4764_p10), [#allocation7], 1024   ;;  %p4765_p3 = pmov %p4764_p10 }
 0x1e5   : > { %3764 = vsyncadd (%p4765_p3), [#allocation7], 4294966272  ;;  %p4766_p8 = pmov %p4765_p3 }
 0x1e6   : > { %p4767_p1 = pmov %p4765_p3 }
 0x1e7   : > { %3766 = dma.done.wait (%p4766_p8), [#allocation10], 1088  }
 0x1e8   : > { %3768 = vsyncadd (%p4767_p1), [#allocation10], 4294966208  ;;  %p4768_p12 = pmov %p4767_p1 }
 0x1e9   : > { %p4769_p13 = pmov %p4767_p1 }
 0x1ea   : > { %3770 = dma.done.wait (%p4768_p12), [#allocation13], 1088  }
 0x1eb   : > { %3772 = vsyncadd (%p4769_p13), [#allocation13], 4294966208  ;;  %p4770_p6 = pmov %p4767_p1 }
 0x1ec   : > { %p4771_p0 = pmov %p4767_p1 }
 0x1ed   : > { %3774 = dma.done.wait (%p4770_p6), [#allocation16], 320  }
 0x1ee   : > { %3776 = vsyncadd (%p4771_p0), [#allocation16], 4294966976  ;;  %p4772_p7 = pmov %p4771_p0 }
 0x1ef   : > { %p4773_p5 = pmov %p4771_p0 }
 0x1f0   : > { %3778 = dma.done.wait (%p4772_p7), [#allocation19], 272  }
 0x1f1   : > { %3780 = vsyncadd (%p4773_p5), [#allocation19], 4294967024  ;;  %p4774_p2 = pmov %p4771_p0 }
 0x1f2   : > { %p4775_p4 = pmov %p4771_p0 }
 0x1f3   : > { %3782 = dma.done.wait (%p4774_p2), [#allocation22], 272  }
 0x1f4   : > { %3784 = vsyncadd (%p4775_p4), [#allocation22], 4294967024  ;;  %p4776_p9 = pmov %p4771_p0 }
 0x1f5   : > { %p4777_p11 = pmov %p4771_p0 }
 0x1f6   : > { %3786 = dma.done.wait (%p4776_p9), [#allocation25], 528  }
 0x1f7   : > { %3788 = vsyncadd (%p4777_p11), [#allocation25], 4294966768  ;;  %vm753_vm0 = vcmask 261120   ;;  %v3836_v0 = vmov 0.0   ;;  %vm3837_vm1 = vmmov 0   ;;  %v3228_v1 = vld [vmem:[#allocation8] sm:$0xff]  }
 0x1f8   : > { %2828 = vmatprep.subr.bf16.mxu1 %v3836_v0  ;;  %2832 = vmatprep.mubr.msk.bf16.mxu1 %vm3837_vm1, %v3836_v0  ;;  %754 = vst.msk [vmem:[#allocation2] sm:$0xff] %vm753_vm0, %v3836_v0  ;;  %v3229_v2 = vld [vmem:[#allocation8 + $0x8] sm:$0xff]   ;;  %v4480_v6 = vld [vmem:[%s4427_s18] sm:$0xff]   ;;  %v2681_v11 = vld [vmem:[#allocation12] ss:$0 sm:$0xff]  ;;  %vm959_vm2 = vcmask 64512  }
 0x1f9   : > { %2844 = vmatprep.subr.bf16.mxu0 %v3836_v0  ;;  %2848 = vmatprep.mubr.msk.bf16.mxu0 %vm3837_vm1, %v3836_v0  ;;  %v4471_v3 = vld [vmem:[%s4417_s6] sm:$0xf]  ;;  %v2677_v19 = vld [vmem:[#allocation9] ss:$0 sm:$0xff]  ;;  %v3234_v24 = vld [vmem:[#allocation14 + $0x8] sm:$0xff]   ;;  %vm1007_vm3 = vcmask 130048  }
 0x1fa   : > { %2829 = vmatpush3.bf16.msra.mxu1 %v3228_v1  ;;  %v3230_v4 = vld [vmem:[#allocation11] sm:$0xff]   ;;  %v3231_v5 = vld [vmem:[#allocation11 + $0x8] sm:$0xff]   ;;  %vm1070_vm4 = vcmask 1043456   ;;  %v3238_v51 = vld [vmem:[#allocation8 + $0x18] sm:$0xff]   ;;  %s4778_s15 = sld [smem:[#allocation40_spill]]  ;;  %vm2352_vm5 = vcmask 523264  }
 0x1fb   : > { %2830 = vmatprep.subr.bf16.mxu1 %v3836_v0  ;;  %v3233_v23 = vld [vmem:[#allocation14] sm:$0xff]   ;;  %v3237_v50 = vld [vmem:[#allocation8 + $0x10] sm:$0xff]   ;;  %v3236_v58 = vld [vmem:[#allocation11 + $0x18] sm:$0xff]   ;;  %s748_s1 = scalar_lea.vmem [#allocation27], %s2662_s10  ;;  %s4779_s26 = sld [smem:[#allocation55_spill]] }
 0x1fc   : > { %2845 = vmatpush3.bf16.msra.mxu0 %v3233_v23  ;;  %v2686_v38 = vld [vmem:[#allocation15] ss:$0 sm:$0xff]  ;;  %v1066_v44 = vld [vmem:[#allocation17] sm:$0xf]  ;;  %v3235_v53 = vld [vmem:[#allocation11 + $0x10] sm:$0xff]   ;;  %s2412_s25 = sshll.u32 %s748_s1, 4  ;;  %s4634_s25 = int_to_ptr.vmem [resolvable:$true] %s2412_s25 }
 0x1fd   : > { %2846 = vmatprep.subr.bf16.mxu0 %v3836_v0  ;;  %v1072_v45 = vsel %vm1070_vm4, %v1066_v44, 0  ;;  %s2398_s11 = scalar_lea.sflag [#allocation5], %s4413_s19  ;;  %s3701_s27 = scalar_lea.vmem %s4634_s25, 128 }
 0x1fe   : > { %2831 = vmatpush3.bf16.msra.mxu1 %v3229_v2  ;;  %p3702_p10 = scmp.ne.s32.totalorder %s4634_s25, %s3701_s27  ;;  %p4780_p3 = scmp.ne.s32.totalorder %s4752_s21, 0 }
 0x1ff   : > { %2836 = vmatprep.subr.bf16.mxu1 %v3836_v0  ;;  %v1064_v63 = vld [vmem:[#allocation2] sm:$0xff]  ;;  %s3838_s3 = smov [#allocation27]  }
 0x200   : > { %2847 = vmatpush3.bf16.msra.mxu0 %v3234_v24  ;;  %s2753_s17 = sshll.u32 %s4778_s15, 7  ;;  %p3703_p8 = pnand %p3702_p10, %p4780_p3 }
 0x201   : > { %2833 = vmatmul.mubr.msk.bf16.vlgmr.msra.gmra.mrb[0].mxu1 %vm753_vm0, %v4471_v3  ;;  %2858 = vmatprep.subr.bf16.mxu0 %v3836_v0  ;;  %s4632_s7 = scalar_lea.hbm %s4779_s26, %s2753_s17  ;;  %s3705_s4 = sshll.u32 %s3838_s3, 4  ;;  %s3706_s4 = int_to_ptr.vmem [resolvable:$false] %s3705_s4 }
 0x202   : > { %2837 = vmatpush3.bf16.msra.mxu1 %v3230_v4  ;;  %2840 = vmatprep.mubr.msk.bf16.mxu1 %vm3837_vm1, %v3836_v0  ;;  %p3704_p1 = pneg %p3703_p8  ;;  %s3707_s6 = scalar_lea.vmem %s3706_s4, 256 }
 0x203   : > { %2838 = vmatprep.subr.bf16.mxu1 %v3836_v0  ;;  %2849 = vmatmul.mubr.msk.bf16.vlgmr.msra.gmra.mrb[0].mxu0 %vm753_vm0, %v4480_v6  ;;  %p3708_p12 = scmp.lt.s32.totalorder %s4634_s25, %s3706_s4  ;;  %p3709_p13 = scmp.lt.s32.totalorder %s3707_s6, %s3701_s27 }
 0x204   : > { %2860 = vmatprep.mubr.msk.bf16.mxu0 %vm3837_vm1, %v3836_v0 }
 0x205   : > { %p3710_p6 = por %p3709_p13, %p3708_p12 }
 0x206   : > { %2839 = vmatpush3.bf16.msra.mxu1 %v3231_v5 }
 0x207   : > { %2852 = vmatprep.subr.bf16.mxu1 %v3836_v0  ;;  %p3711_p0 = pnand %p3710_p6, %p3704_p1 }
 0x209   : > { %2841 = vmatmul.mubr.msk.bf16.vlgmr.msra.gmra.mrb[4].mxu1 %vm753_vm0, %v4480_v6 }
 0x20a   : > { %2854 = vmatprep.mubr.msk.bf16.mxu1 %vm3837_vm1, %v3836_v0 }
 0x2d4   : > { %v815_v7 = vpop.f32.mrb[0].mxu1 }
 0x2d5   : > { %v2834_v8 = vpop.f32.mrb[1].mxu1  ;;  %v816_v21 = vadd.f32 %v2677_v19, %v815_v7 }
 0x2d6   : > { %v818_v9 = vpop.f32.mrb[2].mxu1  ;;  %v950_v31 = vpop.f32.mrb[0].mxu0  ;;  %v2697_v8 = vld [vmem:[#allocation12 + $0x1] ss:$0 sm:$0xff] }
 0x2d7   : > { %v2835_v10 = vpop.f32.mrb[3].mxu1  ;;  %v957_v22 = vpack.c.bf16 %v816_v21, %v816_v21  ;;  %v2850_v32 = vpop.f32.mrb[1].mxu0  ;;  %v951_v39 = vadd.f32 %v2686_v38, %v950_v31  ;;  %v3240_v21 = vld [vmem:[#allocation14 + $0x18] sm:$0xff]  }
 0x2d8   : > { %v953_v40 = vpop.f32.mrb[2].mxu0 }
 0x2d9   : > { %v2851_v41 = vpop.f32.mrb[3].mxu0  ;;  %v954_v42 = vadd.f32 %v2686_v38, %v953_v40 }
 0x2da   : > { %v1421_v41 = vld [vmem:[#allocation17 + $0x4] sm:$0xf] }
 0x2db   : > { %v1020_v43 = vpack.c.bf16 %v954_v42, %v951_v39  ;;  %v1426_v42 = vsel %vm1070_vm4, %v1421_v41, 0 }
 0x2dc   : > { %v886_v12 = vpop.f32.mrb[4].mxu1 }
 0x2dd   : > { %v2842_v13 = vpop.f32.mrb[5].mxu1  ;;  %v887_v15 = vadd.f32 %v2681_v11, %v886_v12  ;;  %2859 = vmatpush3.bf16.msra.mxu0 %v1020_v43 }
 0x2de   : > { %v889_v14 = vpop.f32.mrb[6].mxu1  ;;  %2870 = vmatprep.subr.bf16.mxu0 %v3836_v0 }
 0x2df   : > { %v890_v16 = vadd.f32 %v2681_v11, %v889_v14  ;;  %v2843_v17 = vpop.f32.mrb[7].mxu1 }
 0x2e1   : > { %v958_v18 = vpack.c.bf16 %v890_v16, %v887_v15  ;;  %v2693_v15 = vld [vmem:[#allocation9 + $0x1] ss:$0 sm:$0xff] }
 0x2e3   : > { %v964_v20 = vsel %vm959_vm2, %v958_v18, 0 }
 0x2e4   : > { %2853 = vmatpush3.bf16.xpose.msra.mxu1 %v964_v20  ;;  %v3239_v20 = vld [vmem:[#allocation14 + $0x10] sm:$0xff]  }
 0x2e5   : > { %2864 = vmatprep.subr.bf16.mxu1 %v3836_v0 }
 0x2eb   : > { %2855 = vmatmul.mubr.msk.bf16.vlgmr.msra.gmra.mrb[8].mxu1 %vm959_vm2, %v957_v22 }
 0x2ec   : > { %2866 = vmatprep.mubr.msk.bf16.mxu1 %vm3837_vm1, %v3836_v0  ;;  %2865 = vmatpush3.bf16.msra.mxu1 %v1072_v45 }
 0x2ed   : > { %2878 = vmatprep.subr.bf16.mxu1 %v3836_v0 }
 0x3be   : > { %v1000_v25 = vpop.f32.mrb[8].mxu1 }
 0x3bf   : > { %v1006_v26 = vmul.f32 0.35355338, %v1000_v25  ;;  %v2856_v27 = vpop.f32.mrb[9].mxu1 }
 0x3c0   : > { %v1003_v28 = vpop.f32.mrb[10].mxu1 }
 0x3c1   : > { %v2857_v29 = vpop.f32.mrb[11].mxu1  ;;  %v1008_v30 = vsel %vm1007_vm3, %v1006_v26, -inf }
 0x3c2   : > { %1009 = vmax.xlane.f32.xlu0 %v1008_v30 }
 0x44f   : > { %v1010_v33 = vpop.xlane.xlu0 %1009 }
 0x450   : > { %v1011_v34 = vsub.f32 %v1006_v26, %v1010_v33 }
 0x452   : > { %v1012_v35 = vmul.f32 1.442695, %v1011_v34 }
 0x454   : > { %3261 = vpow2.f32 %v1012_v35  ;;  %v2701_v35 = vld [vmem:[#allocation15 + $0x1] ss:$0 sm:$0xff] }
 0x45e   : > { %v3262_v36 = vpop.eup %3261 }
 0x45f   : > { %v1014_v37 = vsel %vm1007_vm3, %v3262_v36, 0.0 }
 0x460   : > { %1015 = vadd.xlane.f32.xlu0 %v1014_v37 }
 0x4ed   : > { %v1016_v46 = vpop.xlane.xlu0 %1015 }
 0x4ee   : > { %3263 = vrcp.f32 %v1016_v46 }
 0x4f8   : > { %v3264_v47 = vpop.eup %3263 }
 0x4f9   : > { %v1018_v48 = vmul.f32 %v3264_v47, %v3262_v36  ;;  %v3243_v47 = vld [vmem:[#allocation8 + $0x20] sm:$0xff]  }
 0x4fb   : > { %v1019_v49 = vpack.c.bf16 %v1018_v48, %v1018_v48  ;;  %v3244_v48 = vld [vmem:[#allocation8 + $0x28] sm:$0xff]  }
 0x4fd   : > { %2861 = vmatmul.mubr.msk.bf16.vlgmr.msra.gmra.mrb[4].mxu0 %vm1007_vm3, %v1019_v49 }
 0x4fe   : > { %2874 = vmatprep.mubr.msk.bf16.mxu0 %vm3837_vm1, %v3836_v0  ;;  %2871 = vmatpush3.bf16.msra.mxu0 %v3237_v50  ;;  %v3241_v50 = vld [vmem:[#allocation11 + $0x20] sm:$0xff]  }
 0x4ff   : > { %2872 = vmatprep.subr.bf16.mxu0 %v3836_v0 }
 0x502   : > { %2873 = vmatpush3.bf16.msra.mxu0 %v3238_v51 }
 0x503   : > { %2886 = vmatprep.subr.bf16.mxu0 %v3836_v0 }
 0x505   : > { %2875 = vmatmul.mubr.msk.bf16.vlgmr.msra.gmra.mrb[8].mxu0 %vm753_vm0, %v4471_v3 }
 0x506   : > { %2890 = vmatprep.mubr.msk.bf16.mxu0 %vm3837_vm1, %v3836_v0  ;;  %2887 = vmatpush3.bf16.msra.mxu0 %v3239_v20 }
 0x507   : > { %2888 = vmatprep.subr.bf16.mxu0 %v3836_v0 }
 0x50a   : > { %2889 = vmatpush3.bf16.msra.mxu0 %v3240_v21 }
 0x50b   : > { %2900 = vmatprep.subr.bf16.mxu0 %v3836_v0 }
 0x50d   : > { %2891 = vmatmul.mubr.msk.bf16.vlgmr.msra.gmra.mrb[12].mxu0 %vm753_vm0, %v4480_v6 }
 0x50e   : > { %2902 = vmatprep.mubr.msk.bf16.mxu0 %vm3837_vm1, %v3836_v0 }
 0x5d0   : > { %v1058_v52 = vpop.f32.mrb[4].mxu0 }
 0x5d1   : > { %v1065_v54 = vpack.c.bf16 %v1058_v52, %v1058_v52  ;;  %v2862_v55 = vpop.f32.mrb[5].mxu0 }
 0x5d2   : > { %v1061_v56 = vpop.f32.mrb[6].mxu0  ;;  %v3242_v55 = vld [vmem:[#allocation11 + $0x28] sm:$0xff]  }
 0x5d3   : > { %v2863_v57 = vpop.f32.mrb[7].mxu0  ;;  %2867 = vmatmul.mubr.msk.bf16.vlgmr.msra.gmra.mrb[12].mxu1 %vm959_vm2, %v1065_v54 }
 0x5d4   : > { %2879 = vmatpush3.bf16.msra.mxu1 %v3235_v53  ;;  %2882 = vmatprep.mubr.msk.bf16.mxu1 %vm3837_vm1, %v3836_v0 }
 0x5d5   : > { %2880 = vmatprep.subr.bf16.mxu1 %v3836_v0 }
 0x5d8   : > { %2881 = vmatpush3.bf16.msra.mxu1 %v3236_v58  ;;  %v1175_v59 = vpop.f32.mrb[8].mxu0 }
 0x5d9   : > { %2894 = vmatprep.subr.bf16.mxu1 %v3836_v0  ;;  %v2876_v60 = vpop.f32.mrb[9].mxu0  ;;  %v1176_v17 = vadd.f32 %v2693_v15, %v1175_v59 }
 0x5da   : > { %v1178_v61 = vpop.f32.mrb[10].mxu0 }
 0x5db   : > { %2883 = vmatmul.mubr.msk.bf16.vlgmr.msra.gmra.mrb[16].mxu1 %vm753_vm0, %v4480_v6  ;;  %v2877_v62 = vpop.f32.mrb[11].mxu0  ;;  %v1313_v19 = vpack.c.bf16 %v1176_v17, %v1176_v17  ;;  %v3245_v17 = vld [vmem:[#allocation14 + $0x20] sm:$0xff]  }
 0x5dc   : > { %2896 = vmatprep.mubr.msk.bf16.mxu1 %vm3837_vm1, %v3836_v0 }
 0x5e0   : > { %v1306_v28 = vpop.f32.mrb[12].mxu0 }
 0x5e1   : > { %v2892_v29 = vpop.f32.mrb[13].mxu0  ;;  %v1307_v36 = vadd.f32 %v2701_v35, %v1306_v28 }
 0x5e2   : > { %v1309_v37 = vpop.f32.mrb[14].mxu0 }
 0x5e3   : > { %v2893_v38 = vpop.f32.mrb[15].mxu0  ;;  %v1310_v39 = vadd.f32 %v2701_v35, %v1309_v37 }
 0x5e4   : > { %v1775_v38 = vld [vmem:[#allocation17 + $0x8] sm:$0xf] }
 0x5e5   : > { %v1374_v40 = vpack.c.bf16 %v1310_v39, %v1307_v36  ;;  %v1780_v39 = vsel %vm1070_vm4, %v1775_v38, 0 }
 0x5e7   : > { %2901 = vmatpush3.bf16.msra.mxu0 %v1374_v40 }
 0x5e8   : > { %2912 = vmatprep.subr.bf16.mxu0 %v3836_v0 }
 0x6a6   : > { %v1108_v1 = vpop.f32.mrb[12].mxu1 }
 0x6a7   : > { %v1114_v2 = vadd.f32 %v1108_v1, %v1064_v63  ;;  %v2868_v4 = vpop.f32.mrb[13].mxu1 }
 0x6a8   : > { %v1111_v5 = vpop.f32.mrb[14].mxu1  ;;  %v2712_v4 = vld [vmem:[#allocation12 + $0x2] ss:$0 sm:$0xff] }
 0x6a9   : > { %1115 = vst.msk [vmem:[#allocation2] sm:$0xff] %vm753_vm0, %v1114_v2  ;;  %v2869_v7 = vpop.f32.mrb[15].mxu1 }
 0x6ae   : > { %v1240_v9 = vpop.f32.mrb[16].mxu1 }
 0x6af   : > { %v2884_v10 = vpop.f32.mrb[17].mxu1  ;;  %v1241_v12 = vadd.f32 %v2697_v8, %v1240_v9 }
 0x6b0   : > { %v1243_v11 = vpop.f32.mrb[18].mxu1  ;;  %v1418_v60 = vld [vmem:[#allocation2] sm:$0xff] }
 0x6b1   : > { %v1244_v13 = vadd.f32 %v2697_v8, %v1243_v11  ;;  %v2885_v14 = vpop.f32.mrb[19].mxu1 }
 0x6b3   : > { %v1314_v16 = vpack.c.bf16 %v1244_v13, %v1241_v12  ;;  %v2708_v12 = vld [vmem:[#allocation9 + $0x2] ss:$0 sm:$0xff] }
 0x6b5   : > { %v1319_v18 = vsel %vm959_vm2, %v1314_v16, 0 }
 0x6b6   : > { %2895 = vmatpush3.bf16.xpose.msra.mxu1 %v1319_v18  ;;  %v3246_v18 = vld [vmem:[#allocation14 + $0x28] sm:$0xff]  }
 0x6b7   : > { %2906 = vmatprep.subr.bf16.mxu1 %v3836_v0 }
 0x6bd   : > { %2897 = vmatmul.mubr.msk.bf16.vlgmr.msra.gmra.mrb[20].mxu1 %vm959_vm2, %v1313_v19 }
 0x6be   : > { %2908 = vmatprep.mubr.msk.bf16.mxu1 %vm3837_vm1, %v3836_v0  ;;  %2907 = vmatpush3.bf16.msra.mxu1 %v1426_v42 }
 0x6bf   : > { %2920 = vmatprep.subr.bf16.mxu1 %v3836_v0 }
 0x790   : > { %v1355_v22 = vpop.f32.mrb[20].mxu1 }
 0x791   : > { %v1361_v23 = vmul.f32 0.35355338, %v1355_v22  ;;  %v2898_v24 = vpop.f32.mrb[21].mxu1 }
 0x792   : > { %v1358_v25 = vpop.f32.mrb[22].mxu1 }
 0x793   : > { %v2899_v26 = vpop.f32.mrb[23].mxu1  ;;  %v1362_v27 = vsel %vm1007_vm3, %v1361_v23, -inf }
 0x794   : > { %1363 = vmax.xlane.f32.xlu1 %v1362_v27 }
 0x821   : > { %v1364_v30 = vpop.xlane.xlu1 %1363 }
 0x822   : > { %v1365_v31 = vsub.f32 %v1361_v23, %v1364_v30 }
 0x824   : > { %v1366_v32 = vmul.f32 1.442695, %v1365_v31 }
 0x826   : > { %3265 = vpow2.f32 %v1366_v32  ;;  %v2716_v32 = vld [vmem:[#allocation15 + $0x2] ss:$0 sm:$0xff] }
 0x830   : > { %v3266_v33 = vpop.eup %3265 }
 0x831   : > { %v1368_v34 = vsel %vm1007_vm3, %v3266_v33, 0.0 }
 0x832   : > { %1369 = vadd.xlane.f32.xlu1 %v1368_v34 }
 0x8bf   : > { %v1370_v43 = vpop.xlane.xlu1 %1369 }
 0x8c0   : > { %3267 = vrcp.f32 %v1370_v43 }
 0x8ca   : > { %v3268_v44 = vpop.eup %3267 }
 0x8cb   : > { %v1372_v45 = vmul.f32 %v3268_v44, %v3266_v33  ;;  %v3249_v44 = vld [vmem:[#allocation8 + $0x30] sm:$0xff]  }
 0x8cd   : > { %v1373_v46 = vpack.c.bf16 %v1372_v45, %v1372_v45  ;;  %v3250_v45 = vld [vmem:[#allocation8 + $0x38] sm:$0xff]  }
 0x8cf   : > { %2903 = vmatmul.mubr.msk.bf16.vlgmr.msra.gmra.mrb[16].mxu0 %vm1007_vm3, %v1373_v46 }
 0x8d0   : > { %2916 = vmatprep.mubr.msk.bf16.mxu0 %vm3837_vm1, %v3836_v0  ;;  %2913 = vmatpush3.bf16.msra.mxu0 %v3243_v47  ;;  %v3247_v47 = vld [vmem:[#allocation11 + $0x30] sm:$0xff]  }
 0x8d1   : > { %2914 = vmatprep.subr.bf16.mxu0 %v3836_v0 }
 0x8d4   : > { %2915 = vmatpush3.bf16.msra.mxu0 %v3244_v48 }
 0x8d5   : > { %2928 = vmatprep.subr.bf16.mxu0 %v3836_v0 }
 0x8d7   : > { %2917 = vmatmul.mubr.msk.bf16.vlgmr.msra.gmra.mrb[20].mxu0 %vm753_vm0, %v4471_v3 }
 0x8d8   : > { %2932 = vmatprep.mubr.msk.bf16.mxu0 %vm3837_vm1, %v3836_v0  ;;  %2929 = vmatpush3.bf16.msra.mxu0 %v3245_v17 }
 0x8d9   : > { %2930 = vmatprep.subr.bf16.mxu0 %v3836_v0 }
 0x8dc   : > { %2931 = vmatpush3.bf16.msra.mxu0 %v3246_v18 }
 0x8dd   : > { %2942 = vmatprep.subr.bf16.mxu0 %v3836_v0 }
 0x8df   : > { %2933 = vmatmul.mubr.msk.bf16.vlgmr.msra.gmra.mrb[24].mxu0 %vm753_vm0, %v4480_v6 }
 0x8e0   : > { %2944 = vmatprep.mubr.msk.bf16.mxu0 %vm3837_vm1, %v3836_v0 }
 0x9a2   : > { %v1412_v49 = vpop.f32.mrb[16].mxu0 }
 0x9a3   : > { %v1419_v51 = vpack.c.bf16 %v1412_v49, %v1412_v49  ;;  %v2904_v52 = vpop.f32.mrb[17].mxu0 }
 0x9a4   : > { %v1415_v53 = vpop.f32.mrb[18].mxu0  ;;  %v3248_v52 = vld [vmem:[#allocation11 + $0x38] sm:$0xff]  }
 0x9a5   : > { %v2905_v54 = vpop.f32.mrb[19].mxu0  ;;  %2909 = vmatmul.mubr.msk.bf16.vlgmr.msra.gmra.mrb[24].mxu1 %vm959_vm2, %v1419_v51 }
 0x9a6   : > { %2921 = vmatpush3.bf16.msra.mxu1 %v3241_v50  ;;  %2924 = vmatprep.mubr.msk.bf16.mxu1 %vm3837_vm1, %v3836_v0 }
 0x9a7   : > { %2922 = vmatprep.subr.bf16.mxu1 %v3836_v0 }
 0x9aa   : > { %2923 = vmatpush3.bf16.msra.mxu1 %v3242_v55  ;;  %v1529_v56 = vpop.f32.mrb[20].mxu0 }
 0x9ab   : > { %2936 = vmatprep.subr.bf16.mxu1 %v3836_v0  ;;  %v2918_v57 = vpop.f32.mrb[21].mxu0  ;;  %v1530_v14 = vadd.f32 %v2708_v12, %v1529_v56 }
 0x9ac   : > { %v1532_v58 = vpop.f32.mrb[22].mxu0 }
 0x9ad   : > { %2925 = vmatmul.mubr.msk.bf16.vlgmr.msra.gmra.mrb[28].mxu1 %vm753_vm0, %v4480_v6  ;;  %v2919_v59 = vpop.f32.mrb[23].mxu0  ;;  %v1667_v16 = vpack.c.bf16 %v1530_v14, %v1530_v14  ;;  %v3251_v14 = vld [vmem:[#allocation14 + $0x30] sm:$0xff]  }
 0x9ae   : > { %2938 = vmatprep.mubr.msk.bf16.mxu1 %vm3837_vm1, %v3836_v0 }
 0x9b2   : > { %v1660_v25 = vpop.f32.mrb[24].mxu0 }
 0x9b3   : > { %v2934_v26 = vpop.f32.mrb[25].mxu0  ;;  %v1661_v33 = vadd.f32 %v2716_v32, %v1660_v25 }
 0x9b4   : > { %v1663_v34 = vpop.f32.mrb[26].mxu0 }
 0x9b5   : > { %v2935_v35 = vpop.f32.mrb[27].mxu0  ;;  %v1664_v36 = vadd.f32 %v2716_v32, %v1663_v34  ;;  %v2129_v34 = vld [vmem:[#allocation17 + $0xc] sm:$0xf] }
 0x9b6   : > { %v2134_v35 = vsel %vm1070_vm4, %v2129_v34, 0 }
 0x9b7   : > { %v1728_v37 = vpack.c.bf16 %v1664_v36, %v1661_v33 }
 0x9b9   : > { %2943 = vmatpush3.bf16.msra.mxu0 %v1728_v37 }
 0x9ba   : > { %2954 = vmatprep.subr.bf16.mxu0 %v3836_v0 }
 0xa78   : > { %v1462_v61 = vpop.f32.mrb[24].mxu1 }
 0xa79   : > { %v1468_v62 = vadd.f32 %v1462_v61, %v1418_v60  ;;  %v2910_v63 = vpop.f32.mrb[25].mxu1 }
 0xa7a   : > { %v1465_v1 = vpop.f32.mrb[26].mxu1  ;;  %v2727_v63 = vld [vmem:[#allocation12 + $0x3] ss:$0 sm:$0xff] }
 0xa7b   : > { %1469 = vst.msk [vmem:[#allocation2] sm:$0xff] %vm753_vm0, %v1468_v62  ;;  %v2911_v2 = vpop.f32.mrb[27].mxu1 }
 0xa80   : > { %v1594_v5 = vpop.f32.mrb[28].mxu1 }
 0xa81   : > { %v2926_v7 = vpop.f32.mrb[29].mxu1  ;;  %v1595_v9 = vadd.f32 %v2712_v4, %v1594_v5 }
 0xa82   : > { %v1597_v8 = vpop.f32.mrb[30].mxu1  ;;  %v1772_v57 = vld [vmem:[#allocation2] sm:$0xff] }
 0xa83   : > { %v1598_v10 = vadd.f32 %v2712_v4, %v1597_v8  ;;  %v2927_v11 = vpop.f32.mrb[31].mxu1 }
 0xa85   : > { %v1668_v13 = vpack.c.bf16 %v1598_v10, %v1595_v9  ;;  %v2723_v9 = vld [vmem:[#allocation9 + $0x3] ss:$0 sm:$0xff] }
 0xa87   : > { %v1673_v15 = vsel %vm959_vm2, %v1668_v13, 0 }
 0xa88   : > { %2937 = vmatpush3.bf16.xpose.msra.mxu1 %v1673_v15  ;;  %v3252_v15 = vld [vmem:[#allocation14 + $0x38] sm:$0xff]  }
 0xa89   : > { %2948 = vmatprep.subr.bf16.mxu1 %v3836_v0 }
 0xa8f   : > { %2939 = vmatmul.mubr.msk.bf16.vlgmr.msra.gmra.mrb[32].mxu1 %vm959_vm2, %v1667_v16 }
 0xa90   : > { %2950 = vmatprep.mubr.msk.bf16.mxu1 %vm3837_vm1, %v3836_v0  ;;  %2949 = vmatpush3.bf16.msra.mxu1 %v1780_v39 }
 0xa91   : > { %2962 = vmatprep.subr.bf16.mxu1 %v3836_v0 }
 0xb62   : > { %v1709_v19 = vpop.f32.mrb[32].mxu1 }
 0xb63   : > { %v1715_v20 = vmul.f32 0.35355338, %v1709_v19  ;;  %v2940_v21 = vpop.f32.mrb[33].mxu1 }
 0xb64   : > { %v1712_v22 = vpop.f32.mrb[34].mxu1 }
 0xb65   : > { %v2941_v23 = vpop.f32.mrb[35].mxu1  ;;  %v1716_v24 = vsel %vm1007_vm3, %v1715_v20, -inf }
 0xb66   : > { %1717 = vmax.xlane.f32.xlu0 %v1716_v24 }
 0xbf3   : > { %v1718_v27 = vpop.xlane.xlu0 %1717 }
 0xbf4   : > { %v1719_v28 = vsub.f32 %v1715_v20, %v1718_v27 }
 0xbf6   : > { %v1720_v29 = vmul.f32 1.442695, %v1719_v28  ;;  %v2731_v28 = vld [vmem:[#allocation15 + $0x3] ss:$0 sm:$0xff] }
 0xbf8   : > { %3269 = vpow2.f32 %v1720_v29 }
 0xc02   : > { %v3270_v30 = vpop.eup %3269 }
 0xc03   : > { %v1722_v31 = vsel %vm1007_vm3, %v3270_v30, 0.0 }
 0xc04   : > { %1723 = vadd.xlane.f32.xlu1 %v1722_v31 }
 0xc91   : > { %v1724_v40 = vpop.xlane.xlu1 %1723 }
 0xc92   : > { %3271 = vrcp.f32 %v1724_v40 }
 0xc9c   : > { %v3272_v41 = vpop.eup %3271 }
 0xc9d   : > { %v1726_v42 = vmul.f32 %v3272_v41, %v3270_v30 }
 0xc9f   : > { %v1727_v43 = vpack.c.bf16 %v1726_v42, %v1726_v42 }
 0xca1   : > { %2945 = vmatmul.mubr.msk.bf16.vlgmr.msra.gmra.mrb[28].mxu0 %vm1007_vm3, %v1727_v43 }
 0xca2   : > { %2958 = vmatprep.mubr.msk.bf16.mxu0 %vm3837_vm1, %v3836_v0  ;;  %2955 = vmatpush3.bf16.msra.mxu0 %v3249_v44 }
 0xca3   : > { %2956 = vmatprep.subr.bf16.mxu0 %v3836_v0 }
 0xca6   : > { %2957 = vmatpush3.bf16.msra.mxu0 %v3250_v45  ;;  %v3253_v45 = vld [vmem:[#allocation20] sm:$0xff]  }
 0xca7   : > { %2970 = vmatprep.subr.bf16.mxu0 %v3836_v0 }
 0xca9   : > { %2959 = vmatmul.mubr.msk.bf16.vlgmr.msra.gmra.mrb[32].mxu0 %vm753_vm0, %v4471_v3 }
 0xcaa   : > { %2974 = vmatprep.mubr.msk.bf16.mxu0 %vm3837_vm1, %v3836_v0  ;;  %2971 = vmatpush3.bf16.msra.mxu0 %v3251_v14  ;;  %v2746_v14 = vld [vmem:[#allocation26] ss:$0 sm:$0xff] }
 0xcab   : > { %2972 = vmatprep.subr.bf16.mxu0 %v3836_v0 }
 0xcae   : > { %2973 = vmatpush3.bf16.msra.mxu0 %v3252_v15 }
 0xcaf   : > { %2984 = vmatprep.subr.bf16.mxu0 %v3836_v0 }
 0xcb1   : > { %2975 = vmatmul.mubr.msk.bf16.vlgmr.msra.gmra.mrb[36].mxu0 %vm753_vm0, %v4480_v6 }
 0xcb2   : > { %2986 = vmatprep.mubr.msk.bf16.mxu0 %vm3837_vm1, %v3836_v0 }
 0xd74   : > { %v1766_v46 = vpop.f32.mrb[28].mxu0 }
 0xd75   : > { %v1773_v48 = vpack.c.bf16 %v1766_v46, %v1766_v46  ;;  %v2946_v49 = vpop.f32.mrb[29].mxu0  ;;  %v3254_v46 = vld [vmem:[#allocation21] sm:$0xff]  }
 0xd76   : > { %v1769_v50 = vpop.f32.mrb[30].mxu0 }
 0xd77   : > { %v2947_v51 = vpop.f32.mrb[31].mxu0  ;;  %2951 = vmatmul.mubr.msk.bf16.vlgmr.msra.gmra.mrb[36].mxu1 %vm959_vm2, %v1773_v48  ;;  %v3256_v48 = vld [vmem:[#allocation21 + $0x8] sm:$0xff]  }
 0xd78   : > { %2963 = vmatpush3.bf16.msra.mxu1 %v3247_v47  ;;  %2966 = vmatprep.mubr.msk.bf16.mxu1 %vm3837_vm1, %v3836_v0  ;;  %v3255_v47 = vld [vmem:[#allocation20 + $0x8] sm:$0xff]  }
 0xd79   : > { %2964 = vmatprep.subr.bf16.mxu1 %v3836_v0 }
 0xd7c   : > { %2965 = vmatpush3.bf16.msra.mxu1 %v3248_v52  ;;  %v1883_v53 = vpop.f32.mrb[32].mxu0 }
 0xd7d   : > { %2978 = vmatprep.subr.bf16.mxu1 %v3836_v0  ;;  %v2960_v54 = vpop.f32.mrb[33].mxu0  ;;  %v1884_v11 = vadd.f32 %v2723_v9, %v1883_v53 }
 0xd7e   : > { %v1886_v55 = vpop.f32.mrb[34].mxu0 }
 0xd7f   : > { %2967 = vmatmul.mubr.msk.bf16.vlgmr.msra.gmra.mrb[40].mxu1 %vm753_vm0, %v4480_v6  ;;  %v2961_v56 = vpop.f32.mrb[35].mxu0  ;;  %v2021_v13 = vpack.c.bf16 %v1884_v11, %v1884_v11  ;;  %v2738_v55 = vld [vmem:[#allocation18] ss:$0 sm:$0xff] }
 0xd80   : > { %2980 = vmatprep.mubr.msk.bf16.mxu1 %vm3837_vm1, %v3836_v0 }
 0xd84   : > { %v2014_v22 = vpop.f32.mrb[36].mxu0 }
 0xd85   : > { %v2976_v23 = vpop.f32.mrb[37].mxu0  ;;  %v2015_v29 = vadd.f32 %v2731_v28, %v2014_v22 }
 0xd86   : > { %v2017_v30 = vpop.f32.mrb[38].mxu0 }
 0xd87   : > { %v2977_v31 = vpop.f32.mrb[39].mxu0  ;;  %v2018_v32 = vadd.f32 %v2731_v28, %v2017_v30 }
 0xd89   : > { %v2082_v33 = vpack.c.bf16 %v2018_v32, %v2015_v29 }
 0xd8b   : > { %2985 = vmatpush3.bf16.msra.mxu0 %v2082_v33 }
 0xd8c   : > { %2996 = vmatprep.subr.bf16.mxu0 %v3836_v0 }
 0xe4a   : > { %v1816_v58 = vpop.f32.mrb[36].mxu1 }
 0xe4b   : > { %v1822_v59 = vadd.f32 %v1816_v58, %v1772_v57  ;;  %v2952_v60 = vpop.f32.mrb[37].mxu1  ;;  %v3257_v58 = vld [vmem:[#allocation24] sm:$0xff]  }
 0xe4c   : > { %v1819_v61 = vpop.f32.mrb[38].mxu1  ;;  %v3258_v60 = vld [vmem:[#allocation24 + $0x8] sm:$0xff]  }
 0xe4d   : > { %1823 = vst.msk [vmem:[#allocation2] sm:$0xff] %vm753_vm0, %v1822_v59  ;;  %v2953_v62 = vpop.f32.mrb[39].mxu1 }
 0xe52   : > { %v1948_v1 = vpop.f32.mrb[40].mxu1 }
 0xe53   : > { %v2968_v2 = vpop.f32.mrb[41].mxu1  ;;  %v1949_v5 = vadd.f32 %v2727_v63, %v1948_v1  ;;  %v3259_v1 = vld [vmem:[#allocation24 + $0x10] sm:$0xff]  }
 0xe54   : > { %v1951_v4 = vpop.f32.mrb[42].mxu1  ;;  %v2126_v49 = vld [vmem:[#allocation2] sm:$0xff]  ;;  %v3260_v2 = vld [vmem:[#allocation24 + $0x18] sm:$0xff]  }
 0xe55   : > { %v1952_v7 = vadd.f32 %v2727_v63, %v1951_v4  ;;  %v2969_v8 = vpop.f32.mrb[43].mxu1 }
 0xe57   : > { %v2022_v10 = vpack.c.bf16 %v1952_v7, %v1949_v5  ;;  %v2745_v5 = vld [vmem:[#allocation23] ss:$0 sm:$0xff] }
 0xe59   : > { %v2027_v12 = vsel %vm959_vm2, %v2022_v10, 0 }
 0xe5a   : > { %2979 = vmatpush3.bf16.xpose.msra.mxu1 %v2027_v12 }
 0xe5b   : > { %2990 = vmatprep.subr.bf16.mxu1 %v3836_v0 }
 0xe61   : > { %2981 = vmatmul.mubr.msk.bf16.vlgmr.msra.gmra.mrb[44].mxu1 %vm959_vm2, %v2021_v13 }
 0xe62   : > { %2992 = vmatprep.mubr.msk.bf16.mxu1 %vm3837_vm1, %v3836_v0  ;;  %2991 = vmatpush3.bf16.msra.mxu1 %v2134_v35 }
 0xe63   : > { %3004 = vmatprep.subr.bf16.mxu1 %v3836_v0 }
 0xf34   : > { %v2063_v16 = vpop.f32.mrb[44].mxu1 }
 0xf35   : > { %v2069_v17 = vmul.f32 0.35355338, %v2063_v16  ;;  %v2982_v18 = vpop.f32.mrb[45].mxu1 }
 0xf36   : > { %v2066_v19 = vpop.f32.mrb[46].mxu1 }
 0xf37   : > { %v2983_v20 = vpop.f32.mrb[47].mxu1  ;;  %v2070_v21 = vsel %vm1007_vm3, %v2069_v17, -inf }
 0xf38   : > { %2071 = vmax.xlane.f32.xlu0 %v2070_v21 }
 0xfc5   : > { %v2072_v24 = vpop.xlane.xlu0 %2071 }
 0xfc6   : > { %v2073_v25 = vsub.f32 %v2069_v17, %v2072_v24 }
 0xfc8   : > { %v2074_v26 = vmul.f32 1.442695, %v2073_v25 }
 0xfca   : > { %3273 = vpow2.f32 %v2074_v26 }
 0xfd4   : > { %v3274_v27 = vpop.eup %3273 }
 0xfd5   : > { %v2076_v6 = vsel %vm1007_vm3, %v3274_v27, 0.0 }
 0xfd6   : > { %2077 = vadd.xlane.f32.xlu1 %v2076_v6 }
0x1063   : > { %v2078_v36 = vpop.xlane.xlu1 %2077 }
0x1064   : > { %3275 = vrcp.f32 %v2078_v36 }
0x106e   : > { %v3276_v37 = vpop.eup %3275 }
0x106f   : > { %v2080_v38 = vmul.f32 %v3276_v37, %v3274_v27 }
0x1071   : > { %v2081_v39 = vpack.c.bf16 %v2080_v38, %v2080_v38 }
0x1073   : > { %2987 = vmatmul.mubr.msk.bf16.vlgmr.msra.gmra.mrb[40].mxu0 %vm1007_vm3, %v2081_v39 }
0x1074   : > { %3000 = vmatprep.mubr.msk.bf16.mxu0 %vm3837_vm1, %v3836_v0  ;;  %2997 = vmatpush3.bf16.msra.mxu0 %v3254_v46 }
0x1075   : > { %2998 = vmatprep.subr.bf16.mxu0 %v3836_v0 }
0x1078   : > { %2999 = vmatpush3.bf16.msra.mxu0 %v3256_v48 }
0x1079   : > { %3012 = vmatprep.subr.bf16.mxu0 %v3836_v0 }
0x1146   : > { %v2120_v40 = vpop.f32.mrb[40].mxu0 }
0x1147   : > { %v2127_v41 = vpack.c.bf16 %v2120_v40, %v2120_v40  ;;  %v2988_v42 = vpop.f32.mrb[41].mxu0 }
0x1148   : > { %v2123_v43 = vpop.f32.mrb[42].mxu0 }
0x1149   : > { %v2989_v44 = vpop.f32.mrb[43].mxu0  ;;  %2993 = vmatmul.mubr.msk.bf16.vlgmr.msra.gmra.mrb[48].mxu1 %vm959_vm2, %v2127_v41 }
0x114a   : > { %3008 = vmatprep.mubr.msk.bf16.mxu1 %vm3837_vm1, %v3836_v0  ;;  %3005 = vmatpush3.bf16.msra.mxu1 %v3253_v45 }
0x114b   : > { %3006 = vmatprep.subr.bf16.mxu1 %v3836_v0 }
0x114e   : > { %3007 = vmatpush3.bf16.msra.mxu1 %v3255_v47 }
0x1151   : > { %3009 = vmatmul.mubr.msk.bf16.vlgmr.msra.gmra.mrb[52].mxu1 %vm753_vm0, %v4471_v3 }
0x121c   : > { %v2170_v50 = vpop.f32.mrb[48].mxu1 }
0x121d   : > { %v2176_v51 = vadd.f32 %v2170_v50, %v2126_v49  ;;  %v2994_v52 = vpop.f32.mrb[49].mxu1 }
0x121e   : > { %v2173_v53 = vpop.f32.mrb[50].mxu1 }
0x121f   : > { %2177 = vst.msk [vmem:[#allocation2] sm:$0xff] %vm753_vm0, %v2176_v51  ;;  %v2995_v54 = vpop.f32.mrb[51].mxu1 }
0x1224   : > { %v2297_v3 = vpop.f32.mrb[52].mxu1 }
0x1225   : > { %v3010_v61 = vpop.f32.mrb[53].mxu1 }
0x1226   : > { %v2178_v56 = vld [vmem:[#allocation2] sm:$0xff]  ;;  %v2300_v62 = vpop.f32.mrb[54].mxu1 }
0x1227   : > { %v2186_v57 = vadd.f32 %v2738_v55, %v2178_v56  ;;  %v3011_v63 = vpop.f32.mrb[55].mxu1 }
0x1229   : > { %v2191_v59 = vpack.c.bf16 %v2186_v57, %v2186_v57 }
0x122b   : > { %3001 = vmatmul.mubr.msk.bf16.vlgmr.msra.gmra.mrb[44].mxu0 %vm753_vm0, %v2191_v59 }
0x122c   : > { %3013 = vmatpush3.bf16.msra.mxu0 %v3257_v58  ;;  %3020 = vmatprep.mubr.msk.bf16.mxu0 %vm3837_vm1, %v3836_v0 }
0x122d   : > { %3014 = vmatprep.subr.bf16.mxu0 %v3836_v0 }
0x1230   : > { %3015 = vmatpush3.bf16.msra.mxu0 %v3258_v60 }
0x1231   : > { %3016 = vmatprep.subr.bf16.mxu0 %v3836_v0 }
0x1234   : > { %3017 = vmatpush3.bf16.msra.mxu0 %v3259_v1 }
0x1235   : > { %3018 = vmatprep.subr.bf16.mxu0 %v3836_v0 }
0x1238   : > { %3019 = vmatpush3.bf16.msra.mxu0 %v3260_v2 }
0x12fe   : > { %v2245_v4 = vpop.f32.mrb[44].mxu0 }
0x12ff   : > { %v2298_v7 = vadd.f32 %v2297_v3, %v2245_v4  ;;  %v3002_v8 = vpop.f32.mrb[45].mxu0 }
0x1300   : > { %v2248_v9 = vpop.f32.mrb[46].mxu0 }
0x1301   : > { %v2310_v10 = vadd.f32 %v2745_v5, %v2298_v7  ;;  %v3003_v11 = vpop.f32.mrb[47].mxu0 }
0x1303   : > { %v2311_v12 = vmax.f32 %v2310_v10, 0.0 }
0x1305   : > { %v2312_v13 = vpack.c.bf16 %v2311_v12, %v2311_v12 }
0x1307   : > { %3021 = vmatmul.mubr.msk.bf16.vlgmr.msra.gmra.mrb[48].mxu0 %vm2352_vm5, %v2312_v13 }
0x13da   : > { %v2390_v0 = vpop.f32.mrb[48].mxu0 }
0x13db   : > { %v2391_v15 = vadd.f32 %v2746_v14, %v2390_v0  ;;  %v3022_v16 = vpop.f32.mrb[49].mxu0 }
0x13dc   : > { %v2393_v17 = vpop.f32.mrb[50].mxu0 }
0x13dd   : > { %v3023_v18 = vpop.f32.mrb[51].mxu0  ;;  %2396 = vst.msk [vmem:[%s748_s1] sm:$0xff] %vm753_vm0, %v2391_v15 }
0x13de   : > { %3714 = shalt.err (!%p3711_p0)
}
0x13df   : > { %s3715_s19 = scalar_lea.hbm %s4632_s7, 128  ;;  %s3719_s10 = scalar_lea.hbm %s4779_s26, 256 }
0x13e0   : > { %p3716_p7 = scmp.ne.s32.totalorder %s4632_s7, %s3715_s19  ;;  %p3720_p4 = scmp.lt.u32.totalorder %s4632_s7, %s4779_s26 }
0x13e1   : > { %p3721_p9 = scmp.lt.u32.totalorder %s3719_s10, %s3715_s19  ;;  %p3723_p10 = scmp.lt.u32.totalorder %s3715_s19, %s4632_s7 }
0x13e2   : > { %p3717_p5 = pnand %p3716_p7, %p4780_p3 }
0x13e3   : > { %p3722_p11 = por %p3721_p9, %p3720_p4 }
0x13e4   : > { %p3718_p2 = pneg %p3717_p5 }
0x13e5   : > { %p3724_p8 = por %p3723_p10, %p3722_p11 }
0x13e7   : > { %p3725_p1 = pnand %p3724_p8, %p3718_p2 }
0x13e9   : > { %3728 = shalt.err (!%p3725_p1)
}
0x13ea   : > { %3080 = dma.vmem_to_hbm [thread:$0]  (%p4780_p3), %s4634_s25, 128, %s4632_s7, %s2398_s11  }
0x13eb PF: > { %s4781_s15 = sld [smem:[#allocation38_spill]]  ;;  %p4782_p12 = scmp.ne.s32.totalorder %s4753_s30, 0 }
0x13ec   : > { %p4783_p13 = scmp.ge.s32.totalorder %s3815_s23, 2 }
0x13ee   : > { %p3130_p6 = pnand %p4783_p13, %p4782_p12 }
0x13f1   : > { %s2424_s17 = sand.u32 1, %s4781_s15  }
0x13f2   : > { %s2425_s1 = scalar_lea.sflag [#allocation5], %s2424_s17 }
0x13f3   : > { %3790 = dma.done.wait (!%p3130_p6), %s2425_s1, 128  }
0x13f4   : > { %3792 = vsyncadd (!%p3130_p6), %s2425_s1, 4294967168  ;;  %s40_s23 = sadd.s32 1, %s3815_s23   ;;  %s4784_s18 = sld [smem:[#allocation39_spill]] }
0x13f5   : > { %p37_p0 = scmp.ge.s32.totalorder %s40_s23, 4   ;;  %s4785_s19 = smov %s3803_s20 }
0x13f6   : > { %s4786_s20 = smov %s4317_s29  ;;  %s4787_s21 = smov %s3811_s22 }
0x13f7   : > { %s4788_s22 = smov %s4790_s16  ;;  %39 = sbr.rel (!%p37_p0) target bundleno = 28 (0x1c), region = 211 }
0x13fe   :  { %2430 = vsyncpa [#allocation4], 1 }
0x13ff   :  { %2432 = vsyncpa [#allocation4 + $0x1], 1 }
0x1400   :  { %2433 = vsyncpa [#allocation7], 1 }
0x1401   :  { %2435 = vsyncpa [#allocation7 + $0x1], 1 }
0x1402   :  { %2436 = vsyncpa [#allocation10], 1 }
0x1403   :  { %2437 = vsyncpa [#allocation13], 1 }
0x1404   :  { %2438 = vsyncpa [#allocation16], 1 }
0x1405   :  { %2439 = vsyncpa [#allocation19], 1 }
0x1406   :  { %2440 = vsyncpa [#allocation22], 1 }
0x1407   :  { %2441 = vsyncpa [#allocation25], 1 }
0x1408   :  { %2442 = vsyncpa [#allocation5], 1 }
0x1409   :  { %2444 = vsyncpa [#allocation5 + $0x1], 1 }

</bundles_post_ra>
